<compile_context>
chip_gen: v5e
topology: v5e:2x2
jax: 0.10.0
libtpu: 0.0.40
codegen_flags: <defaults>
</compile_context>

<pallas_src>
import functools

import numpy as np
import jax
import jax.numpy as jnp
from jax.experimental import pallas as pl
from jax.experimental.pallas import tpu as pltpu

# ---- synthetic STFT / band configuration (module-level globals in the
#      original file: n_fft, hop_length, freqs, freq_bands) ----
N_FFT = 64
HOP_LENGTH = 16
SAMPLE_RATE = 16000
N_FREQ = N_FFT // 2 + 1
FREQS = SAMPLE_RATE * np.arange(N_FREQ) / N_FFT          # rfft bin centers [Hz]
FREQ_BANDS = [(0.0, 2000.0), (2000.0, 4000.0),
              (4000.0, 6000.0), (6000.0, 8001.0)]         # 4 frequency bands

_DB_SCALE = np.float32(5.0 / np.log(10.0))   # 10*log10(mag) == 5/ln10 * ln(mag^2)
_POW_AMIN = np.float32(1e-20)                # amin(1e-10)^2, power-domain clamp
_LANE = 128                                  # native lane width


def hann_window(n):
    # torch.hann_window(n) default is periodic
    return 0.5 - 0.5 * np.cos(2.0 * np.pi * np.arange(n) / n)


def _round_up(x, m):
    return ((x + m - 1) // m) * m


# ----------------------------------------------------------------------------
# Host-side (numpy) construction of the folded front-end matrix and band mask
# ----------------------------------------------------------------------------
def _build_front_end(T):
    """Folded matrix W : [T, 2*FDPAD] such that for an enhanced signal e [B,T]:
         (e @ W)[:, :FD]            = Re(STFT(e)) flattened frame-major
         (e @ W)[:, FDPAD:FDPAD+FD] = Im(STFT(e)) flattened frame-major
       where STFT == torch.stft(n_fft, hop, hann, center=True, reflect pad)."""
    n_frames = 1 + T // HOP_LENGTH
    FD = n_frames * N_FREQ
    FDPAD = _round_up(FD, _LANE)               # lane-pad to native vreg width
    pad = N_FFT // 2
    assert T > pad, "signal too short for reflect padding"

    # reflect-pad source index (no edge repeat), matches torch / numpy 'reflect'
    P = T + 2 * pad
    src = np.empty(P, np.int64)
    src[pad:pad + T] = np.arange(T)
    src[:pad] = pad - np.arange(pad)
    src[pad + T:] = T - 2 - np.arange(pad)

    win = hann_window(N_FFT)
    k = np.arange(N_FFT)[:, None].astype(np.float64)
    f = np.arange(N_FREQ)[None, :].astype(np.float64)
    ang = 2.0 * np.pi * k * f / N_FFT
    coswin = win[:, None] * np.cos(ang)        # [n_fft, n_freq]
    sinwin = -win[:, None] * np.sin(ang)

    W = np.zeros((T, 2 * FDPAD), np.float64)
    for m in range(n_frames):
        c0 = m * N_FREQ
        for kk in range(N_FFT):
            t = src[m * HOP_LENGTH + kk]       # source sample feeding this tap
            W[t, c0:c0 + N_FREQ] += coswin[kk]
            W[t, FDPAD + c0:FDPAD + c0 + N_FREQ] += sinwin[kk]
    return W.astype(np.float32), n_frames, FD, FDPAD


def _build_band_mask(n_frames, time_bands, FD, FDPAD):
    """Combined normalized mean mask [FDPAD, 128]; row index m*N_FREQ+f,
       column index p*nb_tb+q (freq-band major, matches features.view order),
       zero-padded to a full 128-lane block so the output store is unmasked."""
    nb_fb, nb_tb = len(FREQ_BANDS), len(time_bands)
    nb_out = nb_fb * nb_tb
    assert nb_out <= _LANE
    mask = np.zeros((FDPAD, _LANE), np.float32)
    for p, (lo, hi) in enumerate(FREQ_BANDS):
        fsel = (FREQS >= lo) & (FREQS < hi)
        nf = max(int(fsel.sum()), 1)
        for q, (t0, t1) in enumerate(time_bands):
            tsel = np.zeros(n_frames, bool)
            tsel[t0:t1] = True
            nt = max(int(tsel.sum()), 1)
            w = (tsel[:, None] & fsel[None, :]).astype(np.float32) / float(nf * nt)
            mask[:FD, p * nb_tb + q] = w.reshape(-1)
    return mask, nb_out


# ----------------------------------------------------------------------------
# The single fused kernel: conv -> (folded) STFT -> power -> dB -> band means
# ----------------------------------------------------------------------------
def _fused_kernel(cw_ref, cb_ref, x_ref, dft_ref, mask_ref, o_ref):
    # cw_ref: (3,) SMEM conv taps        cb_ref: (1,) SMEM conv bias
    # x_ref : (B_tile, T)   batch tile of the raw signal (batch folded into M)
    # dft_ref: (T, 2*FDPAD) folded reflect-pad + framing + hann + rDFT matrix
    # mask_ref: (FDPAD, 128) normalized (freq-band x time-band) mean mask
    # o_ref : (B_tile, 128) lane-dense output block (cols >= nb_out are zero)
    x = x_ref[...]                                             # (B_tile, T)
    T = x.shape[-1]
    col = jax.lax.broadcasted_iota(jnp.int32, x.shape, 1)

    # "model": Conv1d(1,1,3,padding=1) — taps via XLU lane rotation + edge mask
    # (pltpu.roll needs a non-negative axis; lane axis of the 2-D slab is 1)
    xm1 = jnp.where(col == 0, 0.0, pltpu.roll(x, shift=1, axis=1))          # x[t-1]
    xp1 = jnp.where(col == T - 1, 0.0, pltpu.roll(x, shift=T - 1, axis=1))  # x[t+1]
    enh = cw_ref[0] * xm1 + cw_ref[1] * x + cw_ref[2] * xp1 + cb_ref[0]

    # entire linear STFT front-end as a single MXU matmul -> [re | im]
    y = jnp.dot(enh, dft_ref[...], preferred_element_type=jnp.float32)  # (B_tile, 2*FDPAD)
    fdp = mask_ref.shape[0]
    re = y[:, :fdp]
    im = y[:, fdp:]
    power = re * re + im * im                                  # |STFT|^2, no sqrt

    # amplitude_to_DB(|STFT|, multiplier=10, amin=1e-10, db_mult=0) in power domain
    db = _DB_SCALE * jnp.log(jnp.maximum(power, _POW_AMIN))    # (B_tile, FDPAD)

    # one matmul -> final flattened feature rows (freq-band major, time-band minor)
    o_ref[...] = jnp.dot(db, mask_ref[...], preferred_element_type=jnp.float32)


# ----------------------------------------------------------------------------
# Cached, jitted forward
# ----------------------------------------------------------------------------
@functools.lru_cache(maxsize=None)
def _get_forward(T, time_bands):
    dft_np, n_frames, FD, FDPAD = _build_front_end(T)
    mask_np, nb_out = _build_band_mask(n_frames, time_bands, FD, FDPAD)
    dft = jnp.asarray(dft_np)      # device-resident constants, built once per (T, bands)
    mask = jnp.asarray(mask_np)

    @jax.jit
    def fwd(x, conv_w, conv_b):
        B = x.shape[0]
        x2 = x.reshape(B, T)

        # fold batch into the matmul M dimension; tile large batches over the grid
        b_tile = _round_up(B, 8) if B <= 128 else 128
        b_pad = _round_up(B, b_tile)
        xb = jnp.pad(x2, ((0, b_pad - B), (0, 0)))

        feats = pl.pallas_call(
            _fused_kernel,
            out_shape=jax.ShapeDtypeStruct((b_pad, _LANE), jnp.float32),
            grid=(b_pad // b_tile,),
            in_specs=[
                pl.BlockSpec(memory_space=pltpu.MemorySpace.SMEM),      # conv_w (3,)
                pl.BlockSpec(memory_space=pltpu.MemorySpace.SMEM),      # conv_b (1,)
                pl.BlockSpec((b_tile, T), lambda i: (i, 0)),            # signal tile
                pl.BlockSpec((T, 2 * FDPAD), lambda i: (0, 0)),         # folded DFT
                pl.BlockSpec((FDPAD, _LANE), lambda i: (0, 0)),         # band mask
            ],
            out_specs=pl.BlockSpec((b_tile, _LANE), lambda i: (i, 0)),
            compiler_params=pltpu.CompilerParams(
                dimension_semantics=("parallel",)),       # batch tiles across TCs (v7x)
        )(conv_w, conv_b, xb, dft, mask)

        # features.view(B, nb_freq_bands * nb_time_bands)
        feats = feats[:B, :nb_out]
        # on-device NaN flag (tiny reduction inside the same jit; host reads 1 scalar)
        nan_flag = jnp.isnan(feats).any()
        return feats, nan_flag

    return fwd


def band_feature_frequency_time_forward(x, time_bands, conv_w, conv_b):
    """x: [B, 1, T] float32 -> ([B, nb_freq_bands * nb_time_bands] float32, nan_flag)."""
    B, C, T = x.shape
    assert C == 1
    fwd = _get_forward(int(T), tuple(tuple(int(v) for v in tb) for tb in time_bands))
    return fwd(x, conv_w, conv_b)


# ----------------------------------------------------------------------------
# Pure-JAX reference (for correctness check)
# ----------------------------------------------------------------------------
def _reference(x, time_bands, conv_w, conv_b):
    x2 = x[:, 0, :]
    xp = jnp.pad(x2, ((0, 0), (1, 1)))
    enhanced = (conv_w[0] * xp[:, :-2] + conv_w[1] * xp[:, 1:-1]
                + conv_w[2] * xp[:, 2:] + conv_b[0])
    T = x2.shape[1]
    pad = N_FFT // 2
    xr = jnp.pad(enhanced, ((0, 0), (pad, pad)), mode="reflect")
    n_frames = 1 + T // HOP_LENGTH
    idx = np.arange(n_frames)[:, None] * HOP_LENGTH + np.arange(N_FFT)[None, :]
    frames = xr[:, idx] * jnp.asarray(hann_window(N_FFT), jnp.float32)
    stft = jnp.fft.rfft(frames.astype(jnp.float32), n=N_FFT, axis=-1)
    mag = jnp.abs(stft).astype(jnp.float32)                      # [B, n_frames, n_freq]
    db = 10.0 * jnp.log10(jnp.maximum(mag, 1e-10))
    outs = []
    for lo, hi in FREQ_BANDS:
        fm = (FREQS >= lo) & (FREQS < hi)
        sub = db[:, :, fm]
        tf = [sub[:, t0:t1, :].mean(axis=(1, 2)) for (t0, t1) in time_bands]
        outs.append(jnp.stack(tf, axis=1))
    return jnp.stack(outs, axis=1).reshape(x.shape[0], -1)


if __name__ == "__main__":
    key = jax.random.PRNGKey(0)
    B, T = 2, 256
    x = jax.random.normal(key, (B, 1, T), dtype=jnp.float32)

    # deterministic synthetic "model" parameters: Conv1d(1,1,3,padding=1)
    conv_w = jnp.array([0.25, 0.5, 0.25], dtype=jnp.float32)
    conv_b = jnp.array([0.1], dtype=jnp.float32)

    n_frames = 1 + T // HOP_LENGTH                                # = 17
    time_bands = [(0, n_frames // 2), (n_frames // 2, n_frames)]  # 2 time bands

    out, nan_flag = jax.block_until_ready(
        band_feature_frequency_time_forward(x, time_bands, conv_w, conv_b))

    # TODO(synk): the original raises ValueError on NaN inside the graph; here the
    # NaN reduction runs on device and only the 1-scalar flag is read host-side.
    if bool(nan_flag):
        raise ValueError("NaN values detected in the extracted features.")

    ref = jax.block_until_ready(_reference(x, time_bands, conv_w, conv_b))
    np.testing.assert_allclose(np.asarray(out), np.asarray(ref),
                               rtol=1e-3, atol=1e-3)

    assert out.shape == (B, len(FREQ_BANDS) * len(time_bands))
    print("KERNEL_OK")
</pallas_src>

<mosaic_0001>
module attributes {stable_mosaic.version = 11 : i64} {
  func.func @_fused_kernel(%arg0: i32, %arg1: memref<3xf32, #tpu.memory_space<smem>>, %arg2: memref<1xf32, #tpu.memory_space<smem>>, %arg3: memref<8x256xf32, #tpu.memory_space<vmem>>, %arg4: memref<256x1280xf32, #tpu.memory_space<vmem>>, %arg5: memref<640x128xf32, #tpu.memory_space<vmem>>, %arg6: memref<8x128xf32, #tpu.memory_space<vmem>>) attributes {dimension_semantics = [#tpu.dimension_semantics<parallel>], iteration_bounds = array<i64: 1>, scalar_prefetch = 0 : i64, scratch_operands = 0 : i64, tpu.core_type = #tpu.core_type<tc>, window_params = [{transform_indices = @transform_0, window_bounds = array<i64: 3>}, {transform_indices = @transform_1, window_bounds = array<i64: 1>}, {transform_indices = @transform_2, window_bounds = array<i64: 8, 256>}, {pipeline_mode = #tpu.pipeline_mode<synchronous>, transform_indices = @transform_3, window_bounds = array<i64: 256, 1280>}, {pipeline_mode = #tpu.pipeline_mode<synchronous>, transform_indices = @transform_4, window_bounds = array<i64: 640, 128>}, {transform_indices = @transform_5, window_bounds = array<i64: 8, 128>}]} {
    %c0 = arith.constant 0 : index
    %c0_0 = arith.constant 0 : index
    %0 = vector.load %arg3[%c0, %c0_0] : memref<8x256xf32, #tpu.memory_space<vmem>>, vector<8x256xf32>
    %1 = tpu.iota {dimensions = array<i32: 1>} : vector<8x256xi32>
    %c0_i32 = arith.constant 0 : i32
    %2 = vector.broadcast %c0_i32 : i32 to vector<8x256xi32>
    %3 = arith.cmpi eq, %1, %2 : vector<8x256xi32>
    %c1_i32 = arith.constant 1 : i32
    %4 = tpu.dynamic_rotate %0 by %c1_i32 dim 1 : vector<8x256xf32>, i32 -> vector<8x256xf32>
    %cst = arith.constant 0.000000e+00 : f32
    %5 = vector.broadcast %cst : f32 to vector<8x256xf32>
    %6 = arith.select %3, %5, %4 : vector<8x256xi1>, vector<8x256xf32>
    %c255_i32 = arith.constant 255 : i32
    %7 = vector.broadcast %c255_i32 : i32 to vector<8x256xi32>
    %8 = arith.cmpi eq, %1, %7 : vector<8x256xi32>
    %c255_i32_1 = arith.constant 255 : i32
    %9 = tpu.dynamic_rotate %0 by %c255_i32_1 dim 1 : vector<8x256xf32>, i32 -> vector<8x256xf32>
    %cst_2 = arith.constant 0.000000e+00 : f32
    %10 = vector.broadcast %cst_2 : f32 to vector<8x256xf32>
    %11 = arith.select %8, %10, %9 : vector<8x256xi1>, vector<8x256xf32>
    %c0_3 = arith.constant 0 : index
    %12 = memref.load %arg1[%c0_3] : memref<3xf32, #tpu.memory_space<smem>>
    %13 = vector.broadcast %12 : f32 to vector<8x256xf32>
    %14 = arith.mulf %13, %6 : vector<8x256xf32>
    %c1 = arith.constant 1 : index
    %15 = memref.load %arg1[%c1] : memref<3xf32, #tpu.memory_space<smem>>
    %16 = vector.broadcast %15 : f32 to vector<8x256xf32>
    %17 = arith.mulf %16, %0 : vector<8x256xf32>
    %18 = arith.addf %14, %17 : vector<8x256xf32>
    %c2 = arith.constant 2 : index
    %19 = memref.load %arg1[%c2] : memref<3xf32, #tpu.memory_space<smem>>
    %20 = vector.broadcast %19 : f32 to vector<8x256xf32>
    %21 = arith.mulf %20, %11 : vector<8x256xf32>
    %22 = arith.addf %18, %21 : vector<8x256xf32>
    %c0_4 = arith.constant 0 : index
    %23 = memref.load %arg2[%c0_4] : memref<1xf32, #tpu.memory_space<smem>>
    %24 = vector.broadcast %23 : f32 to vector<8x256xf32>
    %25 = arith.addf %22, %24 : vector<8x256xf32>
    %c0_5 = arith.constant 0 : index
    %c0_6 = arith.constant 0 : index
    %26 = vector.load %arg4[%c0_5, %c0_6] : memref<256x1280xf32, #tpu.memory_space<vmem>>, vector<256x1280xf32>
    %cst_7 = arith.constant dense<0.000000e+00> : vector<8x1280xf32>
    %27 = tpu.matmul %25, %26, %cst_7 {dimension_numbers = #tpu.dot_dimension_numbers<[1], [0], [0], [1], [0, 0, 1, 1], [], []>} : vector<8x256xf32>, vector<256x1280xf32>, vector<8x1280xf32> -> vector<8x1280xf32>
    %28 = vector.extract_strided_slice %27 {offsets = [0, 0], sizes = [8, 640], strides = [1, 1]} : vector<8x1280xf32> to vector<8x640xf32>
    %29 = vector.extract_strided_slice %27 {offsets = [0, 640], sizes = [8, 640], strides = [1, 1]} : vector<8x1280xf32> to vector<8x640xf32>
    %30 = arith.mulf %28, %28 : vector<8x640xf32>
    %31 = arith.mulf %29, %29 : vector<8x640xf32>
    %32 = arith.addf %30, %31 : vector<8x640xf32>
    %cst_8 = arith.constant 9.99999968E-21 : f32
    %33 = vector.broadcast %cst_8 : f32 to vector<8x640xf32>
    %34 = arith.maximumf %32, %33 : vector<8x640xf32>
    %35 = math.log %34 : vector<8x640xf32>
    %cst_9 = arith.constant 2.17147231 : f32
    %36 = vector.broadcast %cst_9 : f32 to vector<8x640xf32>
    %37 = arith.mulf %36, %35 : vector<8x640xf32>
    %c0_10 = arith.constant 0 : index
    %c0_11 = arith.constant 0 : index
    %38 = vector.load %arg5[%c0_10, %c0_11] : memref<640x128xf32, #tpu.memory_space<vmem>>, vector<640x128xf32>
    %cst_12 = arith.constant dense<0.000000e+00> : vector<8x128xf32>
    %39 = tpu.matmul %37, %38, %cst_12 {dimension_numbers = #tpu.dot_dimension_numbers<[1], [0], [0], [1], [0, 0, 1, 1], [], []>} : vector<8x640xf32>, vector<640x128xf32>, vector<8x128xf32> -> vector<8x128xf32>
    %c0_13 = arith.constant 0 : index
    %c0_14 = arith.constant 0 : index
    %40 = vector.load %arg6[%c0_13, %c0_14] : memref<8x128xf32, #tpu.memory_space<vmem>>, vector<8x128xf32>
    tpu.vector_store %arg6[%c0_13, %c0_14], %39 {strides = array<i32>} : memref<8x128xf32, #tpu.memory_space<vmem>>, vector<8x128xf32>,
    return
  }
  func.func @transform_0(%arg0: i32) -> i32 {
    %c0_i32 = arith.constant 0 : i32
    %c0_i32_0 = arith.constant 0 : i32
    return %c0_i32 : i32
  }
  func.func @transform_1(%arg0: i32) -> i32 {
    %c0_i32 = arith.constant 0 : i32
    %c0_i32_0 = arith.constant 0 : i32
    return %c0_i32 : i32
  }
  func.func @transform_2(%arg0: i32) -> (i32, i32) {
    %c0_i32 = arith.constant 0 : i32
    %c0_i32_0 = arith.constant 0 : i32
    return %arg0, %c0_i32 : i32, i32
  }
  func.func @transform_3(%arg0: i32) -> (i32, i32) {
    %c0_i32 = arith.constant 0 : i32
    %c0_i32_0 = arith.constant 0 : i32
    %c0_i32_1 = arith.constant 0 : i32
    return %c0_i32, %c0_i32_0 : i32, i32
  }
  func.func @transform_4(%arg0: i32) -> (i32, i32) {
    %c0_i32 = arith.constant 0 : i32
    %c0_i32_0 = arith.constant 0 : i32
    %c0_i32_1 = arith.constant 0 : i32
    return %c0_i32, %c0_i32_0 : i32, i32
  }
  func.func @transform_5(%arg0: i32) -> (i32, i32) {
    %c0_i32 = arith.constant 0 : i32
    %c0_i32_0 = arith.constant 0 : i32
    return %arg0, %c0_i32 : i32, i32
  }
}

</mosaic_0001>

<bundles_post_ra>
// kernel: fwd.1
= control target key start
LH: loop header
LB: loop body
LE: loop exit
PB: predicated region body
PF: predicated region fallthrough
CT: control target
= control target key end

     0   :  { %11 = vsyncpa [#allocation5], 0  ;;  %s1260_s0 = inlined_call_operand.hbm [shape: f32[3], index: 0, kind: input, shape index: {}]   ;;  %s1261_s1 = inlined_call_operand.<no memory space> [shape: f32[1], index: 1, kind: input, shape index: {}]   ;;  %s1262_s2 = inlined_call_operand.vmem [shape: f32[8,256], index: 2, kind: input, shape index: {}]   ;;  %s1263_s3 = inlined_call_operand.hbm [shape: f32[256,1280], index: 3, kind: input, shape index: {}]   ;;  %s1264_s4 = inlined_call_operand.hbm [shape: f32[640,128], index: 4, kind: input, shape index: {}]   ;;  %s1265_s5 = inlined_call_operand.vmem [shape: f32[8,128], index: 5, kind: output, shape index: {}]  }
   0x1   :  { %12 = vsyncpa [#allocation4], 0  ;;  %s19_s20 = sshll.u32 %s1260_s0, 4  ;;  %s20_s20 = int_to_ptr.hbm [resolvable:$true] %s19_s20 }
   0x2   :  { %13 = vsyncpa [#allocation8], 0  ;;  %s31_s23 = sshll.u32 %s1263_s3, 4  ;;  %s1143_s24 = smov [#allocation3]   ;;  %s32_s23 = int_to_ptr.hbm [resolvable:$true] %s31_s23 }
   0x3   :  { %22 = dma.hbm_to_smem %s20_s20, 16, %s1143_s24, [#allocation5]  }
   0x4   :  { %s1144_s25 = smov [#allocation6]   ;;  %s1145_s27 = smov 1280  }
   0x5   :  { %s33_s26 = sshll.u32 %s1144_s25, 4  ;;  %s1146_s28 = smov 80   ;;  %s34_s26 = int_to_ptr.vmem [resolvable:$true] %s33_s26 }
   0x6   :  { %39 = dma.hbm_to_vmem [thread:$0]  %s32_s23, 40960, %s34_s26, [#allocation4], %s1145_s27, %s1145_s27, %s1146_s28  }
   0x7   :  { %s44_s6 = sshll.u32 %s1264_s4, 4  ;;  %s1147_s0 = smov [#allocation7]   ;;  %s45_s6 = int_to_ptr.hbm [resolvable:$true] %s44_s6 }
   0x8   :  { %s46_s7 = sshll.u32 %s1147_s0, 4  ;;  %s1148_s8 = smov 128   ;;  %s47_s7 = int_to_ptr.vmem [resolvable:$true] %s46_s7 }
   0x9   :  { %s1149_s9 = smov 8  }
   0xa   :  { %52 = dma.hbm_to_vmem [thread:$0]  %s45_s6, 10240, %s47_s7, [#allocation8], %s1148_s8, %s1148_s8, %s1149_s9  }
   0xb   :  { %1137 = dma.done.wait [#allocation5], 16  }
   0xc   :  { %1138 = vsyncadd [#allocation5], 4294967280 }
   0xd   :  { %1139 = dma.done.wait [#allocation4], 40960  }
   0xe   :  { %1140 = vsyncadd [#allocation4], 4294926336 }
   0xf   :  { %1141 = dma.done.wait [#allocation8], 10240  }
  0x10   :  { %1142 = vsyncadd [#allocation8], 4294957056 }
  0x11   :  { %65 = sfence }
  0x12   :  { %v1194_v0 = vld [vmem:[%s1262_s2] sm:$0xff]  ;;  %v423_v1 = vld [vmem:[#allocation6 + $0x9b0] sm:$0xff]  ;;  %s1150_s4 = smov 127   ;;  %v424_v2 = vld [vmem:[#allocation6 + $0x9b8] sm:$0xff]  ;;  %s1151_s11 = smov 1  }
  0x13   :  { %84 = vrot.lane.b32.xlu1 %v1194_v0, %s1150_s4  ;;  %453 = vmatpush.msra.mxu1 %v423_v1  ;;  %v263_v3 = vld [vmem:[#allocation6 + $0x4b0] sm:$0xff]  ;;  %v264_v4 = vld [vmem:[#allocation6 + $0x4b8] sm:$0xff]  ;;  %v413_v5 = vld [vmem:[#allocation6 + $0x960] sm:$0xff]  ;;  %s1057_s14 = sld [smem:[#allocation3 + $0x2]] }
  0x14   :  { %73 = vrot.lane.b32.xlu0 %v1194_v0, %s1151_s11  ;;  %493 = vmatpush.msra.mxu3 %v424_v2  ;;  %v414_v6 = vld [vmem:[#allocation6 + $0x968] sm:$0xff]  ;;  %v253_v7 = vld [vmem:[#allocation6 + $0x460] sm:$0xff]  ;;  %v403_v9 = vld [vmem:[#allocation6 + $0x910] sm:$0xff]  ;;  %s93_s15 = sld [smem:[#allocation3]] }
  0x15   :  { %433 = vmatpush.msra.mxu0 %v263_v3  ;;  %473 = vmatpush.msra.mxu2 %v264_v4  ;;  %v254_v8 = vld [vmem:[#allocation6 + $0x468] sm:$0xff]  ;;  %v404_v10 = vld [vmem:[#allocation6 + $0x918] sm:$0xff]  ;;  %v243_v11 = vld [vmem:[#allocation6 + $0x410] sm:$0xff] }
  0x16   :  { %454 = vmatpush.msra.mxu1 %v413_v5  ;;  %494 = vmatpush.msra.mxu3 %v414_v6  ;;  %v244_v12 = vld [vmem:[#allocation6 + $0x418] sm:$0xff]  ;;  %v393_v13 = vld [vmem:[#allocation6 + $0x8c0] sm:$0xff]  ;;  %v394_v14 = vld [vmem:[#allocation6 + $0x8c8] sm:$0xff] }
  0x17   :  { %434 = vmatpush.msra.mxu0 %v253_v7  ;;  %474 = vmatpush.msra.mxu2 %v254_v8  ;;  %v1203_v15 = vld [vmem:[%s1262_s2 + $0x8] sm:$0xff]  ;;  %v233_v16 = vld [vmem:[#allocation6 + $0x3c0] sm:$0xff]  ;;  %v383_v18 = vld [vmem:[#allocation6 + $0x870] sm:$0xff]  ;;  %s1056_s2 = sld [smem:[#allocation3 + $0x1]] }
  0x18   :  { %455 = vmatpush.msra.mxu1 %v403_v9  ;;  %495 = vmatpush.msra.mxu3 %v404_v10  ;;  %v234_v17 = vld [vmem:[#allocation6 + $0x3c8] sm:$0xff]  ;;  %v384_v19 = vld [vmem:[#allocation6 + $0x878] sm:$0xff]  ;;  %v223_v20 = vld [vmem:[#allocation6 + $0x370] sm:$0xff] }
  0x19   :  { %435 = vmatpush.msra.mxu0 %v243_v11  ;;  %475 = vmatpush.msra.mxu2 %v244_v12  ;;  %v224_v21 = vld [vmem:[#allocation6 + $0x378] sm:$0xff]  ;;  %v373_v22 = vld [vmem:[#allocation6 + $0x820] sm:$0xff]  ;;  %v374_v23 = vld [vmem:[#allocation6 + $0x828] sm:$0xff] }
  0x1a   :  { %456 = vmatpush.msra.mxu1 %v393_v13  ;;  %496 = vmatpush.msra.mxu3 %v394_v14  ;;  %v213_v24 = vld [vmem:[#allocation6 + $0x320] sm:$0xff]  ;;  %v214_v25 = vld [vmem:[#allocation6 + $0x328] sm:$0xff]  ;;  %v363_v26 = vld [vmem:[#allocation6 + $0x7d0] sm:$0xff] }
  0x1b   :  { %86 = vrot.lane.b32.xlu1 %v1203_v15, %s1150_s4  ;;  %436 = vmatpush.msra.mxu0 %v233_v16  ;;  %v364_v27 = vld [vmem:[#allocation6 + $0x7d8] sm:$0xff]  ;;  %v203_v28 = vld [vmem:[#allocation6 + $0x2d0] sm:$0xff]  ;;  %v353_v30 = vld [vmem:[#allocation6 + $0x780] sm:$0xff] }
  0x1c   :  { %75 = vrot.lane.b32.xlu0 %v1203_v15, %s1151_s11  ;;  %476 = vmatpush.msra.mxu2 %v234_v17  ;;  %v204_v29 = vld [vmem:[#allocation6 + $0x2d8] sm:$0xff]  ;;  %v354_v31 = vld [vmem:[#allocation6 + $0x788] sm:$0xff]  ;;  %v193_v32 = vld [vmem:[#allocation6 + $0x280] sm:$0xff] }
  0x1d   :  { %457 = vmatpush.msra.mxu1 %v383_v18  ;;  %497 = vmatpush.msra.mxu3 %v384_v19  ;;  %v194_v33 = vld [vmem:[#allocation6 + $0x288] sm:$0xff]  ;;  %v343_v34 = vld [vmem:[#allocation6 + $0x730] sm:$0xff]  ;;  %v344_v35 = vld [vmem:[#allocation6 + $0x738] sm:$0xff] }
  0x1e   :  { %437 = vmatpush.msra.mxu0 %v223_v20  ;;  %477 = vmatpush.msra.mxu2 %v224_v21  ;;  %v183_v36 = vld [vmem:[#allocation6 + $0x230] sm:$0xff]  ;;  %v184_v37 = vld [vmem:[#allocation6 + $0x238] sm:$0xff]  ;;  %v333_v38 = vld [vmem:[#allocation6 + $0x6e0] sm:$0xff] }
  0x1f   :  { %458 = vmatpush.msra.mxu1 %v373_v22  ;;  %498 = vmatpush.msra.mxu3 %v374_v23  ;;  %v334_v39 = vld [vmem:[#allocation6 + $0x6e8] sm:$0xff]  ;;  %v173_v40 = vld [vmem:[#allocation6 + $0x1e0] sm:$0xff]  ;;  %v323_v42 = vld [vmem:[#allocation6 + $0x690] sm:$0xff] }
  0x20   :  { %438 = vmatpush.msra.mxu0 %v213_v24  ;;  %478 = vmatpush.msra.mxu2 %v214_v25  ;;  %v174_v41 = vld [vmem:[#allocation6 + $0x1e8] sm:$0xff]  ;;  %v324_v43 = vld [vmem:[#allocation6 + $0x698] sm:$0xff]  ;;  %v163_v44 = vld [vmem:[#allocation6 + $0x190] sm:$0xff] }
  0x21   :  { %459 = vmatpush.msra.mxu1 %v363_v26  ;;  %499 = vmatpush.msra.mxu3 %v364_v27  ;;  %v164_v45 = vld [vmem:[#allocation6 + $0x198] sm:$0xff]  ;;  %v313_v46 = vld [vmem:[#allocation6 + $0x640] sm:$0xff]  ;;  %v314_v47 = vld [vmem:[#allocation6 + $0x648] sm:$0xff] }
  0x22   :  { %439 = vmatpush.msra.mxu0 %v203_v28  ;;  %479 = vmatpush.msra.mxu2 %v204_v29  ;;  %v153_v48 = vld [vmem:[#allocation6 + $0x140] sm:$0xff]  ;;  %v154_v49 = vld [vmem:[#allocation6 + $0x148] sm:$0xff]  ;;  %v303_v50 = vld [vmem:[#allocation6 + $0x5f0] sm:$0xff] }
  0x23   :  { %460 = vmatpush.msra.mxu1 %v353_v30  ;;  %500 = vmatpush.msra.mxu3 %v354_v31  ;;  %v304_v51 = vld [vmem:[#allocation6 + $0x5f8] sm:$0xff]  ;;  %v143_v52 = vld [vmem:[#allocation6 + $0xf0] sm:$0xff]  ;;  %v293_v54 = vld [vmem:[#allocation6 + $0x5a0] sm:$0xff] }
  0x24   :  { %440 = vmatpush.msra.mxu0 %v193_v32  ;;  %480 = vmatpush.msra.mxu2 %v194_v33  ;;  %v144_v53 = vld [vmem:[#allocation6 + $0xf8] sm:$0xff]  ;;  %v294_v55 = vld [vmem:[#allocation6 + $0x5a8] sm:$0xff]  ;;  %v133_v56 = vld [vmem:[#allocation6 + $0xa0] sm:$0xff] }
  0x25   :  { %461 = vmatpush.msra.mxu1 %v343_v34  ;;  %501 = vmatpush.msra.mxu3 %v344_v35  ;;  %v134_v57 = vld [vmem:[#allocation6 + $0xa8] sm:$0xff]  ;;  %v283_v58 = vld [vmem:[#allocation6 + $0x550] sm:$0xff]  ;;  %v284_v59 = vld [vmem:[#allocation6 + $0x558] sm:$0xff] }
  0x26   :  { %441 = vmatpush.msra.mxu0 %v183_v36  ;;  %481 = vmatpush.msra.mxu2 %v184_v37  ;;  %v123_v60 = vld [vmem:[#allocation6 + $0x50] sm:$0xff]  ;;  %v124_v61 = vld [vmem:[#allocation6 + $0x58] sm:$0xff]  ;;  %v273_v62 = vld [vmem:[#allocation6 + $0x500] sm:$0xff] }
  0x27   :  { %462 = vmatpush.msra.mxu1 %v333_v38  ;;  %502 = vmatpush.msra.mxu3 %v334_v39  ;;  %v274_v63 = vld [vmem:[#allocation6 + $0x508] sm:$0xff]  ;;  %v113_v1 = vld [vmem:[#allocation6] sm:$0xff]  ;;  %v415_v7 = vld [vmem:[#allocation6 + $0x970] sm:$0xff] }
  0x28   :  { %442 = vmatpush.msra.mxu0 %v173_v40  ;;  %482 = vmatpush.msra.mxu2 %v174_v41  ;;  %v114_v2 = vld [vmem:[#allocation6 + $0x8] sm:$0xff]  ;;  %v425_v3 = vld [vmem:[#allocation6 + $0x9c0] sm:$0xff]  ;;  %v416_v8 = vld [vmem:[#allocation6 + $0x978] sm:$0xff] }
  0x29   :  { %463 = vmatpush.msra.mxu1 %v323_v42  ;;  %503 = vmatpush.msra.mxu3 %v324_v43  ;;  %v426_v4 = vld [vmem:[#allocation6 + $0x9c8] sm:$0xff]  ;;  %v265_v5 = vld [vmem:[#allocation6 + $0x4c0] sm:$0xff]  ;;  %v255_v9 = vld [vmem:[#allocation6 + $0x470] sm:$0xff] }
  0x2a   :  { %443 = vmatpush.msra.mxu0 %v163_v44  ;;  %483 = vmatpush.msra.mxu2 %v164_v45  ;;  %v266_v6 = vld [vmem:[#allocation6 + $0x4c8] sm:$0xff]  ;;  %v256_v10 = vld [vmem:[#allocation6 + $0x478] sm:$0xff]  ;;  %v405_v11 = vld [vmem:[#allocation6 + $0x920] sm:$0xff] }
  0x2b   :  { %464 = vmatpush.msra.mxu1 %v313_v46  ;;  %504 = vmatpush.msra.mxu3 %v314_v47  ;;  %v406_v12 = vld [vmem:[#allocation6 + $0x928] sm:$0xff]  ;;  %v245_v13 = vld [vmem:[#allocation6 + $0x420] sm:$0xff]  ;;  %v395_v16 = vld [vmem:[#allocation6 + $0x8d0] sm:$0xff] }
  0x2c   :  { %444 = vmatpush.msra.mxu0 %v153_v48  ;;  %484 = vmatpush.msra.mxu2 %v154_v49  ;;  %v246_v14 = vld [vmem:[#allocation6 + $0x428] sm:$0xff]  ;;  %v396_v17 = vld [vmem:[#allocation6 + $0x8d8] sm:$0xff]  ;;  %v235_v18 = vld [vmem:[#allocation6 + $0x3d0] sm:$0xff] }
  0x2d   :  { %465 = vmatpush.msra.mxu1 %v303_v50  ;;  %505 = vmatpush.msra.mxu3 %v304_v51  ;;  %v236_v19 = vld [vmem:[#allocation6 + $0x3d8] sm:$0xff]  ;;  %v385_v20 = vld [vmem:[#allocation6 + $0x880] sm:$0xff]  ;;  %v386_v21 = vld [vmem:[#allocation6 + $0x888] sm:$0xff] }
  0x2e   :  { %445 = vmatpush.msra.mxu0 %v143_v52  ;;  %485 = vmatpush.msra.mxu2 %v144_v53  ;;  %v225_v22 = vld [vmem:[#allocation6 + $0x380] sm:$0xff]  ;;  %v226_v23 = vld [vmem:[#allocation6 + $0x388] sm:$0xff]  ;;  %v375_v24 = vld [vmem:[#allocation6 + $0x830] sm:$0xff] }
  0x2f   :  { %466 = vmatpush.msra.mxu1 %v293_v54  ;;  %506 = vmatpush.msra.mxu3 %v294_v55  ;;  %v376_v25 = vld [vmem:[#allocation6 + $0x838] sm:$0xff]  ;;  %v215_v26 = vld [vmem:[#allocation6 + $0x330] sm:$0xff]  ;;  %v365_v28 = vld [vmem:[#allocation6 + $0x7e0] sm:$0xff] }
  0x30   :  { %446 = vmatpush.msra.mxu0 %v133_v56  ;;  %486 = vmatpush.msra.mxu2 %v134_v57  ;;  %v216_v27 = vld [vmem:[#allocation6 + $0x338] sm:$0xff]  ;;  %v366_v29 = vld [vmem:[#allocation6 + $0x7e8] sm:$0xff]  ;;  %v205_v30 = vld [vmem:[#allocation6 + $0x2e0] sm:$0xff] }
  0x31   :  { %467 = vmatpush.msra.mxu1 %v283_v58  ;;  %507 = vmatpush.msra.mxu3 %v284_v59  ;;  %v206_v31 = vld [vmem:[#allocation6 + $0x2e8] sm:$0xff]  ;;  %v355_v32 = vld [vmem:[#allocation6 + $0x790] sm:$0xff]  ;;  %v356_v33 = vld [vmem:[#allocation6 + $0x798] sm:$0xff] }
  0x32   :  { %447 = vmatpush.msra.mxu0 %v123_v60  ;;  %487 = vmatpush.msra.mxu2 %v124_v61  ;;  %v195_v34 = vld [vmem:[#allocation6 + $0x290] sm:$0xff]  ;;  %v196_v35 = vld [vmem:[#allocation6 + $0x298] sm:$0xff]  ;;  %v345_v36 = vld [vmem:[#allocation6 + $0x740] sm:$0xff] }
  0x33   :  { %468 = vmatpush.msra.mxu1 %v273_v62  ;;  %508 = vmatpush.msra.mxu3 %v274_v63  ;;  %v346_v37 = vld [vmem:[#allocation6 + $0x748] sm:$0xff]  ;;  %v185_v38 = vld [vmem:[#allocation6 + $0x240] sm:$0xff]  ;;  %v335_v40 = vld [vmem:[#allocation6 + $0x6f0] sm:$0xff] }
  0x34   :  { %448 = vmatpush.msra.mxu0 %v113_v1  ;;  %488 = vmatpush.msra.mxu2 %v114_v2  ;;  %v186_v39 = vld [vmem:[#allocation6 + $0x248] sm:$0xff]  ;;  %v336_v41 = vld [vmem:[#allocation6 + $0x6f8] sm:$0xff]  ;;  %v175_v42 = vld [vmem:[#allocation6 + $0x1f0] sm:$0xff] }
  0x35   :  { %533 = vmatpush.msrb.mxu1 %v425_v3  ;;  %573 = vmatpush.msrb.mxu3 %v426_v4  ;;  %v176_v43 = vld [vmem:[#allocation6 + $0x1f8] sm:$0xff]  ;;  %v325_v44 = vld [vmem:[#allocation6 + $0x6a0] sm:$0xff]  ;;  %v326_v45 = vld [vmem:[#allocation6 + $0x6a8] sm:$0xff] }
  0x36   :  { %513 = vmatpush.msrb.mxu0 %v265_v5  ;;  %553 = vmatpush.msrb.mxu2 %v266_v6  ;;  %v165_v46 = vld [vmem:[#allocation6 + $0x1a0] sm:$0xff]  ;;  %v166_v47 = vld [vmem:[#allocation6 + $0x1a8] sm:$0xff]  ;;  %v315_v48 = vld [vmem:[#allocation6 + $0x650] sm:$0xff]  ;;  %v68_v5 = vlaneseq }
  0x37   :  { %534 = vmatpush.msrb.mxu1 %v415_v7  ;;  %574 = vmatpush.msrb.mxu3 %v416_v8  ;;  %v316_v49 = vld [vmem:[#allocation6 + $0x658] sm:$0xff]  ;;  %v155_v50 = vld [vmem:[#allocation6 + $0x150] sm:$0xff]  ;;  %v305_v52 = vld [vmem:[#allocation6 + $0x600] sm:$0xff] }
  0x38   :  { %514 = vmatpush.msrb.mxu0 %v255_v9  ;;  %554 = vmatpush.msrb.mxu2 %v256_v10  ;;  %v156_v51 = vld [vmem:[#allocation6 + $0x158] sm:$0xff]  ;;  %v306_v53 = vld [vmem:[#allocation6 + $0x608] sm:$0xff]  ;;  %v145_v54 = vld [vmem:[#allocation6 + $0x100] sm:$0xff]  ;;  %v69_v6 = vand.u32 127, %v68_v5  ;;  %v98_v10 = vstv %s1056_s2 }
  0x39   :  { %535 = vmatpush.msrb.mxu1 %v405_v11  ;;  %575 = vmatpush.msrb.mxu3 %v406_v12  ;;  %v146_v55 = vld [vmem:[#allocation6 + $0x108] sm:$0xff]  ;;  %v295_v56 = vld [vmem:[#allocation6 + $0x5b0] sm:$0xff]  ;;  %v296_v57 = vld [vmem:[#allocation6 + $0x5b8] sm:$0xff]  ;;  %v104_v11 = vstv %s1057_s14 }
  0x3a   :  { %515 = vmatpush.msrb.mxu0 %v245_v13  ;;  %555 = vmatpush.msrb.mxu2 %v246_v14  ;;  %v135_v58 = vld [vmem:[#allocation6 + $0xb0] sm:$0xff]  ;;  %v136_v59 = vld [vmem:[#allocation6 + $0xb8] sm:$0xff]  ;;  %v285_v60 = vld [vmem:[#allocation6 + $0x560] sm:$0xff]  ;;  %v70_v9 = vadd.s32 128, %v69_v6  ;;  %vm88_vm0 = vcmp.lt.s32.totalorder %v69_v6, 127  ;;  %vm77_vm2 = vcmp.lt.s32.totalorder %v69_v6, 1  ;;  %v94_v13 = vstv %s93_s15 }
  0x3b   :  { %536 = vmatpush.msrb.mxu1 %v395_v16  ;;  %576 = vmatpush.msrb.mxu3 %v396_v17  ;;  %v286_v61 = vld [vmem:[#allocation6 + $0x568] sm:$0xff]  ;;  %v125_v62 = vld [vmem:[#allocation6 + $0x60] sm:$0xff]  ;;  %v275_v1 = vld [vmem:[#allocation6 + $0x510] sm:$0xff]  ;;  %vm71_vm3 = vcmp.eq.s32.totalorder %v69_v6, 0  ;;  %v100_v14 = vmul.f32 %v98_v10, %v1203_v15 }
  0x3c   :  { %516 = vmatpush.msrb.mxu0 %v235_v18  ;;  %556 = vmatpush.msrb.mxu2 %v236_v19  ;;  %v126_v63 = vld [vmem:[#allocation6 + $0x68] sm:$0xff]  ;;  %v276_v2 = vld [vmem:[#allocation6 + $0x518] sm:$0xff]  ;;  %v115_v3 = vld [vmem:[#allocation6 + $0x10] sm:$0xff]  ;;  %vm83_vm1 = vcmp.eq.s32.totalorder %v70_v9, 255  ;;  %v99_v18 = vmul.f32 %v98_v10, %v1194_v0 }
  0x3d   :  { %537 = vmatpush.msrb.mxu1 %v385_v20  ;;  %577 = vmatpush.msrb.mxu3 %v386_v21  ;;  %v116_v4 = vld [vmem:[#allocation6 + $0x18] sm:$0xff]  ;;  %v427_v0 = vld [vmem:[#allocation6 + $0x9d0] sm:$0xff]  ;;  %v337_v6 = vld [vmem:[#allocation6 + $0x700] sm:$0xff] }
  0x3e   :  { %517 = vmatpush.msrb.mxu0 %v225_v22  ;;  %557 = vmatpush.msrb.mxu2 %v226_v23  ;;  %v188_v5 = vld [vmem:[#allocation6 + $0x258] sm:$0xff]  ;;  %v178_v9 = vld [vmem:[#allocation6 + $0x208] sm:$0xff]  ;;  %v327_v10 = vld [vmem:[#allocation6 + $0x6b0] sm:$0xff] }
  0x3f   :  { %538 = vmatpush.msrb.mxu1 %v375_v24  ;;  %578 = vmatpush.msrb.mxu3 %v376_v25 }
  0x40   :  { %518 = vmatpush.msrb.mxu0 %v215_v26  ;;  %558 = vmatpush.msrb.mxu2 %v216_v27 }
  0x41   :  { %539 = vmatpush.msrb.mxu1 %v365_v28  ;;  %579 = vmatpush.msrb.mxu3 %v366_v29  ;;  %v110_v29 = vstv %s1261_s1 }
  0x42   :  { %519 = vmatpush.msrb.mxu0 %v205_v30  ;;  %559 = vmatpush.msrb.mxu2 %v206_v31 }
  0x43   :  { %540 = vmatpush.msrb.mxu1 %v355_v32  ;;  %580 = vmatpush.msrb.mxu3 %v356_v33  ;;  %v428_v33 = vld [vmem:[#allocation6 + $0x9d8] sm:$0xff] }
  0x44   :  { %520 = vmatpush.msrb.mxu0 %v195_v34  ;;  %560 = vmatpush.msrb.mxu2 %v196_v35  ;;  %v267_v35 = vld [vmem:[#allocation6 + $0x4d0] sm:$0xff] }
  0x45   :  { %541 = vmatpush.msrb.mxu1 %v345_v36  ;;  %581 = vmatpush.msrb.mxu3 %v346_v37  ;;  %v268_v36 = vld [vmem:[#allocation6 + $0x4d8] sm:$0xff]  ;;  %v417_v37 = vld [vmem:[#allocation6 + $0x980] sm:$0xff] }
  0x46   :  { %521 = vmatpush.msrb.mxu0 %v185_v38  ;;  %561 = vmatpush.msrb.mxu2 %v186_v39  ;;  %v418_v38 = vld [vmem:[#allocation6 + $0x988] sm:$0xff]  ;;  %v257_v39 = vld [vmem:[#allocation6 + $0x480] sm:$0xff] }
  0x47   :  { %542 = vmatpush.msrb.mxu1 %v335_v40  ;;  %582 = vmatpush.msrb.mxu3 %v336_v41  ;;  %v258_v40 = vld [vmem:[#allocation6 + $0x488] sm:$0xff]  ;;  %v407_v41 = vld [vmem:[#allocation6 + $0x930] sm:$0xff] }
  0x48   :  { %522 = vmatpush.msrb.mxu0 %v175_v42  ;;  %562 = vmatpush.msrb.mxu2 %v176_v43  ;;  %v408_v42 = vld [vmem:[#allocation6 + $0x938] sm:$0xff]  ;;  %v247_v43 = vld [vmem:[#allocation6 + $0x430] sm:$0xff] }
  0x49   :  { %543 = vmatpush.msrb.mxu1 %v325_v44  ;;  %583 = vmatpush.msrb.mxu3 %v326_v45  ;;  %v248_v44 = vld [vmem:[#allocation6 + $0x438] sm:$0xff]  ;;  %v397_v45 = vld [vmem:[#allocation6 + $0x8e0] sm:$0xff] }
  0x4a   :  { %523 = vmatpush.msrb.mxu0 %v165_v46  ;;  %563 = vmatpush.msrb.mxu2 %v166_v47  ;;  %v398_v46 = vld [vmem:[#allocation6 + $0x8e8] sm:$0xff]  ;;  %v237_v47 = vld [vmem:[#allocation6 + $0x3e0] sm:$0xff] }
  0x4b   :  { %544 = vmatpush.msrb.mxu1 %v315_v48  ;;  %584 = vmatpush.msrb.mxu3 %v316_v49  ;;  %v238_v48 = vld [vmem:[#allocation6 + $0x3e8] sm:$0xff]  ;;  %v387_v49 = vld [vmem:[#allocation6 + $0x890] sm:$0xff] }
  0x4c   :  { %524 = vmatpush.msrb.mxu0 %v155_v50  ;;  %564 = vmatpush.msrb.mxu2 %v156_v51  ;;  %v388_v50 = vld [vmem:[#allocation6 + $0x898] sm:$0xff]  ;;  %v227_v51 = vld [vmem:[#allocation6 + $0x390] sm:$0xff] }
  0x4d   :  { %545 = vmatpush.msrb.mxu1 %v305_v52  ;;  %585 = vmatpush.msrb.mxu3 %v306_v53  ;;  %v228_v52 = vld [vmem:[#allocation6 + $0x398] sm:$0xff]  ;;  %v377_v53 = vld [vmem:[#allocation6 + $0x840] sm:$0xff] }
  0x4e   :  { %525 = vmatpush.msrb.mxu0 %v145_v54  ;;  %565 = vmatpush.msrb.mxu2 %v146_v55  ;;  %v378_v54 = vld [vmem:[#allocation6 + $0x848] sm:$0xff]  ;;  %v217_v55 = vld [vmem:[#allocation6 + $0x340] sm:$0xff] }
  0x4f   :  { %546 = vmatpush.msrb.mxu1 %v295_v56  ;;  %586 = vmatpush.msrb.mxu3 %v296_v57  ;;  %v218_v56 = vld [vmem:[#allocation6 + $0x348] sm:$0xff]  ;;  %v367_v57 = vld [vmem:[#allocation6 + $0x7f0] sm:$0xff] }
  0x50   :  { %526 = vmatpush.msrb.mxu0 %v135_v58  ;;  %566 = vmatpush.msrb.mxu2 %v136_v59  ;;  %v368_v58 = vld [vmem:[#allocation6 + $0x7f8] sm:$0xff]  ;;  %v207_v59 = vld [vmem:[#allocation6 + $0x2f0] sm:$0xff] }
  0x51   :  { %547 = vmatpush.msrb.mxu1 %v285_v60  ;;  %587 = vmatpush.msrb.mxu3 %v286_v61  ;;  %v208_v60 = vld [vmem:[#allocation6 + $0x2f8] sm:$0xff]  ;;  %v357_v61 = vld [vmem:[#allocation6 + $0x7a0] sm:$0xff] }
  0x52   :  { %527 = vmatpush.msrb.mxu0 %v125_v62  ;;  %567 = vmatpush.msrb.mxu2 %v126_v63  ;;  %v358_v62 = vld [vmem:[#allocation6 + $0x7a8] sm:$0xff]  ;;  %v197_v63 = vld [vmem:[#allocation6 + $0x2a0] sm:$0xff] }
  0x53   :  { %548 = vmatpush.msrb.mxu1 %v275_v1  ;;  %588 = vmatpush.msrb.mxu3 %v276_v2  ;;  %v198_v1 = vld [vmem:[#allocation6 + $0x2a8] sm:$0xff]  ;;  %v347_v2 = vld [vmem:[#allocation6 + $0x750] sm:$0xff] }
  0x54   :  { %528 = vmatpush.msrb.mxu0 %v115_v3  ;;  %568 = vmatpush.msrb.mxu2 %v116_v4  ;;  %v348_v3 = vld [vmem:[#allocation6 + $0x758] sm:$0xff]  ;;  %v187_v4 = vld [vmem:[#allocation6 + $0x250] sm:$0xff] }
  0x85   :  { %v85_v7 = vpop.permute.xlu1 %84 }
  0x86   :  { %v74_v8 = vpop.permute.xlu0 %73 }
  0x8d   :  { %v87_v12 = vpop.permute.xlu1 %86 }
  0x8e   :  { %v90_v16 = vsel %vm88_vm0, %v87_v12, %v85_v7  ;;  %v76_v17 = vpop.permute.xlu0 %75  ;;  %v89_v22 = vsel %vm88_vm0, %v85_v7, %v87_v12  ;;  %v338_v7 = vld [vmem:[#allocation6 + $0x708] sm:$0xff]  ;;  %v167_v12 = vld [vmem:[#allocation6 + $0x1b0] sm:$0xff] }
  0x8f   :  { %v92_v19 = vsel %vm83_vm1, 0.0, %v90_v16  ;;  %v78_v20 = vsel %vm77_vm2, %v74_v8, %v76_v17  ;;  %v79_v21 = vsel %vm77_vm2, %v76_v17, %v74_v8  ;;  %v105_v28 = vmul.f32 %v104_v11, %v89_v22  ;;  %v177_v8 = vld [vmem:[#allocation6 + $0x200] sm:$0xff]  ;;  %v318_v16 = vld [vmem:[#allocation6 + $0x668] sm:$0xff]  ;;  %v148_v22 = vld [vmem:[#allocation6 + $0x118] sm:$0xff] }
  0x90   :  { %v106_v23 = vmul.f32 %v104_v11, %v92_v19  ;;  %v80_v24 = vsel %vm71_vm3, 0.0, %v79_v21  ;;  %v96_v25 = vmul.f32 %v94_v13, %v78_v20  ;;  %v328_v11 = vld [vmem:[#allocation6 + $0x6b8] sm:$0xff]  ;;  %v157_v17 = vld [vmem:[#allocation6 + $0x160] sm:$0xff]  ;;  %v307_v19 = vld [vmem:[#allocation6 + $0x610] sm:$0xff] }
  0x91   :  { %v95_v26 = vmul.f32 %v94_v13, %v80_v24  ;;  %v168_v13 = vld [vmem:[#allocation6 + $0x1b8] sm:$0xff]  ;;  %v147_v21 = vld [vmem:[#allocation6 + $0x110] sm:$0xff]  ;;  %v298_v24 = vld [vmem:[#allocation6 + $0x5c8] sm:$0xff] }
  0x92   :  { %v102_v27 = vadd.f32 %v100_v14, %v96_v25  ;;  %v317_v14 = vld [vmem:[#allocation6 + $0x660] sm:$0xff]  ;;  %v308_v20 = vld [vmem:[#allocation6 + $0x618] sm:$0xff] }
  0x93   :  { %v101_v30 = vadd.f32 %v99_v18, %v95_v26  ;;  %v158_v18 = vld [vmem:[#allocation6 + $0x168] sm:$0xff]  ;;  %v137_v25 = vld [vmem:[#allocation6 + $0xc0] sm:$0xff] }
  0x94   :  { %v108_v15 = vadd.f32 %v106_v23, %v102_v27  ;;  %v297_v23 = vld [vmem:[#allocation6 + $0x5c0] sm:$0xff]  ;;  %v138_v26 = vld [vmem:[#allocation6 + $0xc8] sm:$0xff]  ;;  %v287_v27 = vld [vmem:[#allocation6 + $0x570] sm:$0xff] }
  0x95   :  { %v107_v31 = vadd.f32 %v105_v28, %v101_v30  ;;  %v288_v28 = vld [vmem:[#allocation6 + $0x578] sm:$0xff] }
  0x96   :  { %v1214_v32 = vadd.f32 %v110_v29, %v108_v15  ;;  %v128_v30 = vld [vmem:[#allocation6 + $0x78] sm:$0xff]  ;;  %v277_v15 = vld [vmem:[#allocation6 + $0x520] sm:$0xff] }
  0x97   :  { %v1216_v34 = vadd.f32 %v110_v29, %v107_v31  ;;  %v127_v29 = vld [vmem:[#allocation6 + $0x70] sm:$0xff]  ;;  %v278_v31 = vld [vmem:[#allocation6 + $0x528] sm:$0xff] }
  0x98   :  { %469 = vmatmul.f32.vlgmr.msra.gmra.mxu1 %v1214_v32  ;;  %509 = vmatmul.f32.vlgmr.msra.gmra.mxu3 %v1214_v32 }
  0x99   :  { %613 = vmatpush.msra.mxu1 %v427_v0  ;;  %653 = vmatpush.msra.mxu3 %v428_v33  ;;  %v117_v0 = vld [vmem:[#allocation6 + $0x20] sm:$0xff]  ;;  %v118_v33 = vld [vmem:[#allocation6 + $0x28] sm:$0xff] }
  0x9a   :  { %449 = vmatmul.f32.vlgmr.msra.gmra.mxu0 %v1216_v34  ;;  %489 = vmatmul.f32.vlgmr.msra.gmra.mxu2 %v1216_v34 }
  0x9b   :  { %593 = vmatpush.msra.mxu0 %v267_v35  ;;  %633 = vmatpush.msra.mxu2 %v268_v36  ;;  %v429_v35 = vld [vmem:[#allocation6 + $0x9e0] sm:$0xff]  ;;  %v430_v36 = vld [vmem:[#allocation6 + $0x9e8] sm:$0xff] }
  0x9c   :  { %614 = vmatpush.msra.mxu1 %v417_v37  ;;  %654 = vmatpush.msra.mxu3 %v418_v38  ;;  %v269_v37 = vld [vmem:[#allocation6 + $0x4e0] sm:$0xff]  ;;  %v270_v38 = vld [vmem:[#allocation6 + $0x4e8] sm:$0xff] }
  0x9d   :  { %594 = vmatpush.msra.mxu0 %v257_v39  ;;  %634 = vmatpush.msra.mxu2 %v258_v40  ;;  %v419_v39 = vld [vmem:[#allocation6 + $0x990] sm:$0xff]  ;;  %v420_v40 = vld [vmem:[#allocation6 + $0x998] sm:$0xff] }
  0x9e   :  { %615 = vmatpush.msra.mxu1 %v407_v41  ;;  %655 = vmatpush.msra.mxu3 %v408_v42  ;;  %v259_v41 = vld [vmem:[#allocation6 + $0x490] sm:$0xff]  ;;  %v260_v42 = vld [vmem:[#allocation6 + $0x498] sm:$0xff] }
  0x9f   :  { %595 = vmatpush.msra.mxu0 %v247_v43  ;;  %635 = vmatpush.msra.mxu2 %v248_v44  ;;  %v409_v43 = vld [vmem:[#allocation6 + $0x940] sm:$0xff]  ;;  %v410_v44 = vld [vmem:[#allocation6 + $0x948] sm:$0xff] }
  0xa0   :  { %616 = vmatpush.msra.mxu1 %v397_v45  ;;  %656 = vmatpush.msra.mxu3 %v398_v46  ;;  %v249_v45 = vld [vmem:[#allocation6 + $0x440] sm:$0xff]  ;;  %v250_v46 = vld [vmem:[#allocation6 + $0x448] sm:$0xff] }
  0xa1   :  { %596 = vmatpush.msra.mxu0 %v237_v47  ;;  %636 = vmatpush.msra.mxu2 %v238_v48  ;;  %v399_v47 = vld [vmem:[#allocation6 + $0x8f0] sm:$0xff]  ;;  %v400_v48 = vld [vmem:[#allocation6 + $0x8f8] sm:$0xff] }
  0xa2   :  { %549 = vmatmul.f32.vlgmr.msrb.gmra.mxu1 %v1214_v32  ;;  %589 = vmatmul.f32.vlgmr.msrb.gmra.mxu3 %v1214_v32 }
  0xa3   :  { %617 = vmatpush.msra.mxu1 %v387_v49  ;;  %657 = vmatpush.msra.mxu3 %v388_v50  ;;  %v239_v49 = vld [vmem:[#allocation6 + $0x3f0] sm:$0xff]  ;;  %v240_v50 = vld [vmem:[#allocation6 + $0x3f8] sm:$0xff] }
  0xa4   :  { %529 = vmatmul.f32.vlgmr.msrb.gmra.mxu0 %v1216_v34  ;;  %569 = vmatmul.f32.vlgmr.msrb.gmra.mxu2 %v1216_v34 }
  0xa5   :  { %597 = vmatpush.msra.mxu0 %v227_v51  ;;  %637 = vmatpush.msra.mxu2 %v228_v52  ;;  %v389_v51 = vld [vmem:[#allocation6 + $0x8a0] sm:$0xff]  ;;  %v390_v52 = vld [vmem:[#allocation6 + $0x8a8] sm:$0xff] }
  0xa6   :  { %618 = vmatpush.msra.mxu1 %v377_v53  ;;  %658 = vmatpush.msra.mxu3 %v378_v54  ;;  %v229_v53 = vld [vmem:[#allocation6 + $0x3a0] sm:$0xff]  ;;  %v230_v54 = vld [vmem:[#allocation6 + $0x3a8] sm:$0xff] }
  0xa7   :  { %598 = vmatpush.msra.mxu0 %v217_v55  ;;  %638 = vmatpush.msra.mxu2 %v218_v56  ;;  %v379_v55 = vld [vmem:[#allocation6 + $0x850] sm:$0xff]  ;;  %v380_v56 = vld [vmem:[#allocation6 + $0x858] sm:$0xff] }
  0xa8   :  { %619 = vmatpush.msra.mxu1 %v367_v57  ;;  %659 = vmatpush.msra.mxu3 %v368_v58  ;;  %v219_v57 = vld [vmem:[#allocation6 + $0x350] sm:$0xff]  ;;  %v220_v58 = vld [vmem:[#allocation6 + $0x358] sm:$0xff] }
  0xa9   :  { %599 = vmatpush.msra.mxu0 %v207_v59  ;;  %639 = vmatpush.msra.mxu2 %v208_v60  ;;  %v369_v59 = vld [vmem:[#allocation6 + $0x800] sm:$0xff]  ;;  %v370_v60 = vld [vmem:[#allocation6 + $0x808] sm:$0xff] }
  0xaa   :  { %620 = vmatpush.msra.mxu1 %v357_v61  ;;  %660 = vmatpush.msra.mxu3 %v358_v62  ;;  %v209_v61 = vld [vmem:[#allocation6 + $0x300] sm:$0xff]  ;;  %v210_v62 = vld [vmem:[#allocation6 + $0x308] sm:$0xff] }
  0xab   :  { %600 = vmatpush.msra.mxu0 %v197_v63  ;;  %640 = vmatpush.msra.mxu2 %v198_v1  ;;  %v359_v63 = vld [vmem:[#allocation6 + $0x7b0] sm:$0xff]  ;;  %v360_v1 = vld [vmem:[#allocation6 + $0x7b8] sm:$0xff] }
  0xac   :  { %621 = vmatpush.msra.mxu1 %v347_v2  ;;  %661 = vmatpush.msra.mxu3 %v348_v3  ;;  %v199_v2 = vld [vmem:[#allocation6 + $0x2b0] sm:$0xff]  ;;  %v200_v3 = vld [vmem:[#allocation6 + $0x2b8] sm:$0xff] }
  0xad   :  { %601 = vmatpush.msra.mxu0 %v187_v4  ;;  %641 = vmatpush.msra.mxu2 %v188_v5  ;;  %v349_v4 = vld [vmem:[#allocation6 + $0x760] sm:$0xff]  ;;  %v350_v5 = vld [vmem:[#allocation6 + $0x768] sm:$0xff] }
  0xae   :  { %622 = vmatpush.msra.mxu1 %v337_v6  ;;  %662 = vmatpush.msra.mxu3 %v338_v7  ;;  %v189_v6 = vld [vmem:[#allocation6 + $0x260] sm:$0xff]  ;;  %v190_v7 = vld [vmem:[#allocation6 + $0x268] sm:$0xff] }
  0xaf   :  { %602 = vmatpush.msra.mxu0 %v177_v8  ;;  %642 = vmatpush.msra.mxu2 %v178_v9  ;;  %v339_v8 = vld [vmem:[#allocation6 + $0x710] sm:$0xff]  ;;  %v340_v9 = vld [vmem:[#allocation6 + $0x718] sm:$0xff] }
  0xb0   :  { %623 = vmatpush.msra.mxu1 %v327_v10  ;;  %663 = vmatpush.msra.mxu3 %v328_v11  ;;  %v179_v10 = vld [vmem:[#allocation6 + $0x210] sm:$0xff]  ;;  %v180_v11 = vld [vmem:[#allocation6 + $0x218] sm:$0xff] }
  0xb1   :  { %603 = vmatpush.msra.mxu0 %v167_v12  ;;  %643 = vmatpush.msra.mxu2 %v168_v13  ;;  %v329_v12 = vld [vmem:[#allocation6 + $0x6c0] sm:$0xff]  ;;  %v330_v13 = vld [vmem:[#allocation6 + $0x6c8] sm:$0xff] }
  0xb2   :  { %624 = vmatpush.msra.mxu1 %v317_v14  ;;  %664 = vmatpush.msra.mxu3 %v318_v16  ;;  %v169_v14 = vld [vmem:[#allocation6 + $0x1c0] sm:$0xff]  ;;  %v170_v16 = vld [vmem:[#allocation6 + $0x1c8] sm:$0xff] }
  0xb3   :  { %604 = vmatpush.msra.mxu0 %v157_v17  ;;  %644 = vmatpush.msra.mxu2 %v158_v18  ;;  %v319_v17 = vld [vmem:[#allocation6 + $0x670] sm:$0xff]  ;;  %v320_v18 = vld [vmem:[#allocation6 + $0x678] sm:$0xff] }
  0xb4   :  { %625 = vmatpush.msra.mxu1 %v307_v19  ;;  %665 = vmatpush.msra.mxu3 %v308_v20  ;;  %v159_v19 = vld [vmem:[#allocation6 + $0x170] sm:$0xff]  ;;  %v160_v20 = vld [vmem:[#allocation6 + $0x178] sm:$0xff] }
  0xb5   :  { %605 = vmatpush.msra.mxu0 %v147_v21  ;;  %645 = vmatpush.msra.mxu2 %v148_v22  ;;  %v309_v21 = vld [vmem:[#allocation6 + $0x620] sm:$0xff]  ;;  %v310_v22 = vld [vmem:[#allocation6 + $0x628] sm:$0xff] }
  0xb6   :  { %626 = vmatpush.msra.mxu1 %v297_v23  ;;  %666 = vmatpush.msra.mxu3 %v298_v24  ;;  %v149_v23 = vld [vmem:[#allocation6 + $0x120] sm:$0xff]  ;;  %v150_v24 = vld [vmem:[#allocation6 + $0x128] sm:$0xff] }
  0xb7   :  { %606 = vmatpush.msra.mxu0 %v137_v25  ;;  %646 = vmatpush.msra.mxu2 %v138_v26  ;;  %v299_v25 = vld [vmem:[#allocation6 + $0x5d0] sm:$0xff]  ;;  %v300_v26 = vld [vmem:[#allocation6 + $0x5d8] sm:$0xff] }
  0xb8   :  { %627 = vmatpush.msra.mxu1 %v287_v27  ;;  %667 = vmatpush.msra.mxu3 %v288_v28  ;;  %v139_v27 = vld [vmem:[#allocation6 + $0xd0] sm:$0xff]  ;;  %v140_v28 = vld [vmem:[#allocation6 + $0xd8] sm:$0xff] }
  0xb9   :  { %607 = vmatpush.msra.mxu0 %v127_v29  ;;  %647 = vmatpush.msra.mxu2 %v128_v30  ;;  %v289_v29 = vld [vmem:[#allocation6 + $0x580] sm:$0xff]  ;;  %v290_v30 = vld [vmem:[#allocation6 + $0x588] sm:$0xff] }
  0xba   :  { %628 = vmatpush.msra.mxu1 %v277_v15  ;;  %668 = vmatpush.msra.mxu3 %v278_v31  ;;  %v129_v15 = vld [vmem:[#allocation6 + $0x80] sm:$0xff]  ;;  %v130_v31 = vld [vmem:[#allocation6 + $0x88] sm:$0xff] }
  0xbb   :  { %608 = vmatpush.msra.mxu0 %v117_v0  ;;  %629 = vmatmul.f32.vlgmr.msra.gmra.mxu1 %v1214_v32  ;;  %v279_v0 = vld [vmem:[#allocation6 + $0x530] sm:$0xff] }
  0xbc   :  { %648 = vmatpush.msra.mxu2 %v118_v33  ;;  %669 = vmatmul.f32.vlgmr.msra.gmra.mxu3 %v1214_v32  ;;  %v280_v33 = vld [vmem:[#allocation6 + $0x538] sm:$0xff] }
  0xbd   :  { %693 = vmatpush.msrb.mxu1 %v429_v35  ;;  %733 = vmatpush.msrb.mxu3 %v430_v36  ;;  %v119_v35 = vld [vmem:[#allocation6 + $0x30] sm:$0xff]  ;;  %v120_v36 = vld [vmem:[#allocation6 + $0x38] sm:$0xff] }
  0xbe   :  { %609 = vmatmul.f32.vlgmr.msra.gmra.mxu0 %v1216_v34  ;;  %649 = vmatmul.f32.vlgmr.msra.gmra.mxu2 %v1216_v34 }
  0xbf   :  { %673 = vmatpush.msrb.mxu0 %v269_v37  ;;  %713 = vmatpush.msrb.mxu2 %v270_v38  ;;  %v431_v37 = vld [vmem:[#allocation6 + $0x9f0] sm:$0xff]  ;;  %v432_v38 = vld [vmem:[#allocation6 + $0x9f8] sm:$0xff] }
  0xc0   :  { %694 = vmatpush.msrb.mxu1 %v419_v39  ;;  %734 = vmatpush.msrb.mxu3 %v420_v40  ;;  %v271_v39 = vld [vmem:[#allocation6 + $0x4f0] sm:$0xff]  ;;  %v272_v40 = vld [vmem:[#allocation6 + $0x4f8] sm:$0xff] }
  0xc1   :  { %674 = vmatpush.msrb.mxu0 %v259_v41  ;;  %714 = vmatpush.msrb.mxu2 %v260_v42  ;;  %v421_v41 = vld [vmem:[#allocation6 + $0x9a0] sm:$0xff]  ;;  %v422_v42 = vld [vmem:[#allocation6 + $0x9a8] sm:$0xff] }
  0xc2   :  { %695 = vmatpush.msrb.mxu1 %v409_v43  ;;  %735 = vmatpush.msrb.mxu3 %v410_v44  ;;  %v261_v43 = vld [vmem:[#allocation6 + $0x4a0] sm:$0xff]  ;;  %v262_v44 = vld [vmem:[#allocation6 + $0x4a8] sm:$0xff] }
  0xc3   :  { %675 = vmatpush.msrb.mxu0 %v249_v45  ;;  %715 = vmatpush.msrb.mxu2 %v250_v46  ;;  %v411_v45 = vld [vmem:[#allocation6 + $0x950] sm:$0xff]  ;;  %v412_v46 = vld [vmem:[#allocation6 + $0x958] sm:$0xff] }
  0xc4   :  { %696 = vmatpush.msrb.mxu1 %v399_v47  ;;  %736 = vmatpush.msrb.mxu3 %v400_v48  ;;  %v251_v47 = vld [vmem:[#allocation6 + $0x450] sm:$0xff]  ;;  %v252_v48 = vld [vmem:[#allocation6 + $0x458] sm:$0xff] }
  0xc5   :  { %676 = vmatpush.msrb.mxu0 %v239_v49  ;;  %716 = vmatpush.msrb.mxu2 %v240_v50  ;;  %v401_v49 = vld [vmem:[#allocation6 + $0x900] sm:$0xff]  ;;  %v402_v50 = vld [vmem:[#allocation6 + $0x908] sm:$0xff] }
  0xc6   :  { %697 = vmatpush.msrb.mxu1 %v389_v51  ;;  %737 = vmatpush.msrb.mxu3 %v390_v52  ;;  %v241_v51 = vld [vmem:[#allocation6 + $0x400] sm:$0xff]  ;;  %v242_v52 = vld [vmem:[#allocation6 + $0x408] sm:$0xff] }
  0xc7   :  { %677 = vmatpush.msrb.mxu0 %v229_v53  ;;  %717 = vmatpush.msrb.mxu2 %v230_v54  ;;  %v391_v53 = vld [vmem:[#allocation6 + $0x8b0] sm:$0xff]  ;;  %v392_v54 = vld [vmem:[#allocation6 + $0x8b8] sm:$0xff] }
  0xc8   :  { %698 = vmatpush.msrb.mxu1 %v379_v55  ;;  %738 = vmatpush.msrb.mxu3 %v380_v56  ;;  %v231_v55 = vld [vmem:[#allocation6 + $0x3b0] sm:$0xff]  ;;  %v232_v56 = vld [vmem:[#allocation6 + $0x3b8] sm:$0xff] }
  0xc9   :  { %678 = vmatpush.msrb.mxu0 %v219_v57  ;;  %718 = vmatpush.msrb.mxu2 %v220_v58  ;;  %v381_v57 = vld [vmem:[#allocation6 + $0x860] sm:$0xff]  ;;  %v382_v58 = vld [vmem:[#allocation6 + $0x868] sm:$0xff] }
  0xca   :  { %699 = vmatpush.msrb.mxu1 %v369_v59  ;;  %739 = vmatpush.msrb.mxu3 %v370_v60  ;;  %v221_v59 = vld [vmem:[#allocation6 + $0x360] sm:$0xff]  ;;  %v222_v60 = vld [vmem:[#allocation6 + $0x368] sm:$0xff] }
  0xcb   :  { %679 = vmatpush.msrb.mxu0 %v209_v61  ;;  %719 = vmatpush.msrb.mxu2 %v210_v62  ;;  %v371_v61 = vld [vmem:[#allocation6 + $0x810] sm:$0xff]  ;;  %v372_v62 = vld [vmem:[#allocation6 + $0x818] sm:$0xff] }
  0xcc   :  { %700 = vmatpush.msrb.mxu1 %v359_v63  ;;  %740 = vmatpush.msrb.mxu3 %v360_v1  ;;  %v211_v63 = vld [vmem:[#allocation6 + $0x310] sm:$0xff]  ;;  %v212_v1 = vld [vmem:[#allocation6 + $0x318] sm:$0xff] }
  0xcd   :  { %680 = vmatpush.msrb.mxu0 %v199_v2  ;;  %720 = vmatpush.msrb.mxu2 %v200_v3  ;;  %v361_v2 = vld [vmem:[#allocation6 + $0x7c0] sm:$0xff]  ;;  %v362_v3 = vld [vmem:[#allocation6 + $0x7c8] sm:$0xff] }
  0xce   :  { %701 = vmatpush.msrb.mxu1 %v349_v4  ;;  %741 = vmatpush.msrb.mxu3 %v350_v5  ;;  %v201_v4 = vld [vmem:[#allocation6 + $0x2c0] sm:$0xff]  ;;  %v202_v5 = vld [vmem:[#allocation6 + $0x2c8] sm:$0xff] }
  0xcf   :  { %681 = vmatpush.msrb.mxu0 %v189_v6  ;;  %721 = vmatpush.msrb.mxu2 %v190_v7  ;;  %v351_v6 = vld [vmem:[#allocation6 + $0x770] sm:$0xff]  ;;  %v352_v7 = vld [vmem:[#allocation6 + $0x778] sm:$0xff] }
  0xd0   :  { %702 = vmatpush.msrb.mxu1 %v339_v8  ;;  %742 = vmatpush.msrb.mxu3 %v340_v9  ;;  %v191_v8 = vld [vmem:[#allocation6 + $0x270] sm:$0xff]  ;;  %v192_v9 = vld [vmem:[#allocation6 + $0x278] sm:$0xff] }
  0xd1   :  { %682 = vmatpush.msrb.mxu0 %v179_v10  ;;  %722 = vmatpush.msrb.mxu2 %v180_v11  ;;  %v341_v10 = vld [vmem:[#allocation6 + $0x720] sm:$0xff]  ;;  %v342_v11 = vld [vmem:[#allocation6 + $0x728] sm:$0xff] }
  0xd2   :  { %703 = vmatpush.msrb.mxu1 %v329_v12  ;;  %743 = vmatpush.msrb.mxu3 %v330_v13  ;;  %v181_v12 = vld [vmem:[#allocation6 + $0x220] sm:$0xff]  ;;  %v182_v13 = vld [vmem:[#allocation6 + $0x228] sm:$0xff] }
  0xd3   :  { %683 = vmatpush.msrb.mxu0 %v169_v14  ;;  %723 = vmatpush.msrb.mxu2 %v170_v16  ;;  %v331_v14 = vld [vmem:[#allocation6 + $0x6d0] sm:$0xff]  ;;  %v332_v16 = vld [vmem:[#allocation6 + $0x6d8] sm:$0xff] }
  0xd4   :  { %704 = vmatpush.msrb.mxu1 %v319_v17  ;;  %744 = vmatpush.msrb.mxu3 %v320_v18  ;;  %v171_v17 = vld [vmem:[#allocation6 + $0x1d0] sm:$0xff]  ;;  %v172_v18 = vld [vmem:[#allocation6 + $0x1d8] sm:$0xff] }
  0xd5   :  { %684 = vmatpush.msrb.mxu0 %v159_v19  ;;  %724 = vmatpush.msrb.mxu2 %v160_v20  ;;  %v321_v19 = vld [vmem:[#allocation6 + $0x680] sm:$0xff]  ;;  %v322_v20 = vld [vmem:[#allocation6 + $0x688] sm:$0xff] }
  0xd6   :  { %705 = vmatpush.msrb.mxu1 %v309_v21  ;;  %745 = vmatpush.msrb.mxu3 %v310_v22  ;;  %v161_v21 = vld [vmem:[#allocation6 + $0x180] sm:$0xff]  ;;  %v162_v22 = vld [vmem:[#allocation6 + $0x188] sm:$0xff] }
  0xd7   :  { %685 = vmatpush.msrb.mxu0 %v149_v23  ;;  %725 = vmatpush.msrb.mxu2 %v150_v24  ;;  %v311_v23 = vld [vmem:[#allocation6 + $0x630] sm:$0xff]  ;;  %v312_v24 = vld [vmem:[#allocation6 + $0x638] sm:$0xff] }
  0xd8   :  { %706 = vmatpush.msrb.mxu1 %v299_v25  ;;  %746 = vmatpush.msrb.mxu3 %v300_v26  ;;  %v151_v25 = vld [vmem:[#allocation6 + $0x130] sm:$0xff]  ;;  %v152_v26 = vld [vmem:[#allocation6 + $0x138] sm:$0xff] }
  0xd9   :  { %686 = vmatpush.msrb.mxu0 %v139_v27  ;;  %726 = vmatpush.msrb.mxu2 %v140_v28  ;;  %v301_v27 = vld [vmem:[#allocation6 + $0x5e0] sm:$0xff]  ;;  %v302_v28 = vld [vmem:[#allocation6 + $0x5e8] sm:$0xff] }
  0xda   :  { %707 = vmatpush.msrb.mxu1 %v289_v29  ;;  %747 = vmatpush.msrb.mxu3 %v290_v30  ;;  %v141_v29 = vld [vmem:[#allocation6 + $0xe0] sm:$0xff]  ;;  %v142_v30 = vld [vmem:[#allocation6 + $0xe8] sm:$0xff] }
  0xdb   :  { %687 = vmatpush.msrb.mxu0 %v129_v15  ;;  %727 = vmatpush.msrb.mxu2 %v130_v31  ;;  %v291_v15 = vld [vmem:[#allocation6 + $0x590] sm:$0xff]  ;;  %v292_v31 = vld [vmem:[#allocation6 + $0x598] sm:$0xff] }
  0xdc   :  { %708 = vmatpush.msrb.mxu1 %v279_v0  ;;  %748 = vmatpush.msrb.mxu3 %v280_v33  ;;  %v131_v0 = vld [vmem:[#allocation6 + $0x90] sm:$0xff]  ;;  %v132_v33 = vld [vmem:[#allocation6 + $0x98] sm:$0xff] }
  0xdd   :  { %688 = vmatpush.msrb.mxu0 %v119_v35  ;;  %709 = vmatmul.f32.vlgmr.msrb.gmra.mxu1 %v1214_v32  ;;  %v281_v35 = vld [vmem:[#allocation6 + $0x540] sm:$0xff] }
  0xde   :  { %728 = vmatpush.msrb.mxu2 %v120_v36  ;;  %749 = vmatmul.f32.vlgmr.msrb.gmra.mxu3 %v1214_v32  ;;  %v282_v36 = vld [vmem:[#allocation6 + $0x548] sm:$0xff] }
  0xdf   :  { %773 = vmatpush.msra.mxu1 %v431_v37  ;;  %813 = vmatpush.msra.mxu3 %v432_v38  ;;  %v121_v37 = vld [vmem:[#allocation6 + $0x40] sm:$0xff]  ;;  %v122_v38 = vld [vmem:[#allocation6 + $0x48] sm:$0xff] }
  0xe0   :  { %689 = vmatmul.f32.vlgmr.msrb.gmra.mxu0 %v1216_v34  ;;  %729 = vmatmul.f32.vlgmr.msrb.gmra.mxu2 %v1216_v34 }
  0xe1   :  { %753 = vmatpush.msra.mxu0 %v271_v39  ;;  %793 = vmatpush.msra.mxu2 %v272_v40  ;;  %v883_v39 = vld [vmem:[#allocation7 + $0x78] sm:$0xff]  ;;  %v882_v40 = vld [vmem:[#allocation7 + $0x70] sm:$0xff] }
  0xe2   :  { %774 = vmatpush.msra.mxu1 %v421_v41  ;;  %814 = vmatpush.msra.mxu3 %v422_v42  ;;  %v881_v41 = vld [vmem:[#allocation7 + $0x68] sm:$0xff] }
  0xe3   :  { %754 = vmatpush.msra.mxu0 %v261_v43  ;;  %794 = vmatpush.msra.mxu2 %v262_v44  ;;  %v880_v44 = vld [vmem:[#allocation7 + $0x60] sm:$0xff] }
  0xe4   :  { %775 = vmatpush.msra.mxu1 %v411_v45  ;;  %815 = vmatpush.msra.mxu3 %v412_v46  ;;  %v879_v45 = vld [vmem:[#allocation7 + $0x58] sm:$0xff]  ;;  %v878_v46 = vld [vmem:[#allocation7 + $0x50] sm:$0xff] }
  0xe5   :  { %755 = vmatpush.msra.mxu0 %v251_v47  ;;  %795 = vmatpush.msra.mxu2 %v252_v48  ;;  %v877_v47 = vld [vmem:[#allocation7 + $0x48] sm:$0xff] }
  0xe6   :  { %776 = vmatpush.msra.mxu1 %v401_v49  ;;  %816 = vmatpush.msra.mxu3 %v402_v50  ;;  %v876_v49 = vld [vmem:[#allocation7 + $0x40] sm:$0xff]  ;;  %v875_v50 = vld [vmem:[#allocation7 + $0x38] sm:$0xff] }
  0xe7   :  { %756 = vmatpush.msra.mxu0 %v241_v51  ;;  %796 = vmatpush.msra.mxu2 %v242_v52  ;;  %v874_v51 = vld [vmem:[#allocation7 + $0x30] sm:$0xff]  ;;  %v873_v52 = vld [vmem:[#allocation7 + $0x28] sm:$0xff] }
  0xe8   :  { %777 = vmatpush.msra.mxu1 %v391_v53  ;;  %817 = vmatpush.msra.mxu3 %v392_v54  ;;  %v872_v53 = vld [vmem:[#allocation7 + $0x20] sm:$0xff]  ;;  %v871_v54 = vld [vmem:[#allocation7 + $0x18] sm:$0xff] }
  0xe9   :  { %757 = vmatpush.msra.mxu0 %v231_v55  ;;  %797 = vmatpush.msra.mxu2 %v232_v56  ;;  %v899_v55 = vld [vmem:[#allocation7 + $0xf8] sm:$0xff]  ;;  %v870_v56 = vld [vmem:[#allocation7 + $0x10] sm:$0xff] }
  0xea   :  { %778 = vmatpush.msra.mxu1 %v381_v57  ;;  %818 = vmatpush.msra.mxu3 %v382_v58  ;;  %v898_v57 = vld [vmem:[#allocation7 + $0xf0] sm:$0xff]  ;;  %v869_v58 = vld [vmem:[#allocation7 + $0x8] sm:$0xff] }
  0xeb   :  { %758 = vmatpush.msra.mxu0 %v221_v59  ;;  %798 = vmatpush.msra.mxu2 %v222_v60  ;;  %v897_v59 = vld [vmem:[#allocation7 + $0xe8] sm:$0xff]  ;;  %v915_v60 = vld [vmem:[#allocation7 + $0x178] sm:$0xff] }
  0xec   :  { %779 = vmatpush.msra.mxu1 %v371_v61  ;;  %819 = vmatpush.msra.mxu3 %v372_v62  ;;  %v868_v61 = vld [vmem:[#allocation7] sm:$0xff]  ;;  %v914_v62 = vld [vmem:[#allocation7 + $0x170] sm:$0xff] }
  0xed   :  { %759 = vmatpush.msra.mxu0 %v211_v63  ;;  %799 = vmatpush.msra.mxu2 %v212_v1  ;;  %v896_v63 = vld [vmem:[#allocation7 + $0xe0] sm:$0xff]  ;;  %v895_v1 = vld [vmem:[#allocation7 + $0xd8] sm:$0xff] }
  0xee   :  { %780 = vmatpush.msra.mxu1 %v361_v2  ;;  %820 = vmatpush.msra.mxu3 %v362_v3  ;;  %v913_v2 = vld [vmem:[#allocation7 + $0x168] sm:$0xff]  ;;  %v894_v3 = vld [vmem:[#allocation7 + $0xd0] sm:$0xff] }
  0xef   :  { %760 = vmatpush.msra.mxu0 %v201_v4  ;;  %800 = vmatpush.msra.mxu2 %v202_v5 }
  0xf0   :  { %781 = vmatpush.msra.mxu1 %v351_v6  ;;  %821 = vmatpush.msra.mxu3 %v352_v7  ;;  %v893_v7 = vld [vmem:[#allocation7 + $0xc8] sm:$0xff] }
  0xf1   :  { %761 = vmatpush.msra.mxu0 %v191_v8  ;;  %801 = vmatpush.msra.mxu2 %v192_v9  ;;  %v912_v8 = vld [vmem:[#allocation7 + $0x160] sm:$0xff] }
  0xf2   :  { %782 = vmatpush.msra.mxu1 %v341_v10  ;;  %822 = vmatpush.msra.mxu3 %v342_v11  ;;  %v892_v11 = vld [vmem:[#allocation7 + $0xc0] sm:$0xff] }
  0xf3   :  { %762 = vmatpush.msra.mxu0 %v181_v12  ;;  %802 = vmatpush.msra.mxu2 %v182_v13  ;;  %v911_v12 = vld [vmem:[#allocation7 + $0x158] sm:$0xff] }
  0xf4   :  { %783 = vmatpush.msra.mxu1 %v331_v14  ;;  %823 = vmatpush.msra.mxu3 %v332_v16  ;;  %v891_v14 = vld [vmem:[#allocation7 + $0xb8] sm:$0xff]  ;;  %v910_v16 = vld [vmem:[#allocation7 + $0x150] sm:$0xff] }
  0xf5   :  { %763 = vmatpush.msra.mxu0 %v171_v17  ;;  %803 = vmatpush.msra.mxu2 %v172_v18 }
  0xf6   :  { %784 = vmatpush.msra.mxu1 %v321_v19  ;;  %824 = vmatpush.msra.mxu3 %v322_v20  ;;  %v890_v19 = vld [vmem:[#allocation7 + $0xb0] sm:$0xff]  ;;  %v909_v20 = vld [vmem:[#allocation7 + $0x148] sm:$0xff] }
  0xf7   :  { %764 = vmatpush.msra.mxu0 %v161_v21  ;;  %804 = vmatpush.msra.mxu2 %v162_v22  ;;  %v889_v22 = vld [vmem:[#allocation7 + $0xa8] sm:$0xff] }
  0xf8   :  { %785 = vmatpush.msra.mxu1 %v311_v23  ;;  %825 = vmatpush.msra.mxu3 %v312_v24  ;;  %v908_v23 = vld [vmem:[#allocation7 + $0x140] sm:$0xff] }
  0xf9   :  { %765 = vmatpush.msra.mxu0 %v151_v25  ;;  %805 = vmatpush.msra.mxu2 %v152_v26  ;;  %v888_v25 = vld [vmem:[#allocation7 + $0xa0] sm:$0xff]  ;;  %v907_v26 = vld [vmem:[#allocation7 + $0x138] sm:$0xff] }
  0xfa   :  { %786 = vmatpush.msra.mxu1 %v301_v27  ;;  %826 = vmatpush.msra.mxu3 %v302_v28  ;;  %v887_v28 = vld [vmem:[#allocation7 + $0x98] sm:$0xff] }
  0xfb   :  { %766 = vmatpush.msra.mxu0 %v141_v29  ;;  %806 = vmatpush.msra.mxu2 %v142_v30  ;;  %v906_v29 = vld [vmem:[#allocation7 + $0x130] sm:$0xff] }
  0xfc   :  { %787 = vmatpush.msra.mxu1 %v291_v15  ;;  %827 = vmatpush.msra.mxu3 %v292_v31  ;;  %v886_v15 = vld [vmem:[#allocation7 + $0x90] sm:$0xff]  ;;  %v905_v31 = vld [vmem:[#allocation7 + $0x128] sm:$0xff] }
  0xfd   :  { %767 = vmatpush.msra.mxu0 %v131_v0  ;;  %807 = vmatpush.msra.mxu2 %v132_v33  ;;  %v885_v0 = vld [vmem:[#allocation7 + $0x88] sm:$0xff]  ;;  %v904_v33 = vld [vmem:[#allocation7 + $0x120] sm:$0xff] }
  0xfe   :  { %788 = vmatpush.msra.mxu1 %v281_v35  ;;  %828 = vmatpush.msra.mxu3 %v282_v36 }
  0xff   :  { %768 = vmatpush.msra.mxu0 %v121_v37  ;;  %789 = vmatmul.f32.vlgmr.msra.gmra.mxu1 %v1214_v32  ;;  %v884_v37 = vld [vmem:[#allocation7 + $0x80] sm:$0xff] }
 0x100   :  { %808 = vmatpush.msra.mxu2 %v122_v38  ;;  %829 = vmatmul.f32.vlgmr.msra.gmra.mxu3 %v1214_v32  ;;  %v903_v38 = vld [vmem:[#allocation7 + $0x118] sm:$0xff] }
 0x101   :  { %769 = vmatmul.f32.vlgmr.msra.gmra.mxu0 %v1216_v34  ;;  %809 = vmatmul.f32.vlgmr.msra.gmra.mxu2 %v1216_v34 }
 0x102   :  { %948 = vmatpush.msrb.mxu0 %v883_v39  ;;  %968 = vmatpush.msrb.mxu1 %v899_v55  ;;  %v931_v39 = vld [vmem:[#allocation7 + $0x1f8] sm:$0xff]  ;;  %v926_v55 = vld [vmem:[#allocation7 + $0x1d0] sm:$0xff] }
 0x103   :  { %988 = vmatpush.msrb.mxu2 %v915_v60  ;;  %1008 = vmatpush.msrb.mxu3 %v931_v39  ;;  %v944_v60 = vld [vmem:[#allocation7 + $0x260] sm:$0xff] }
 0x104   :  { %949 = vmatpush.msrb.mxu0 %v882_v40  ;;  %969 = vmatpush.msrb.mxu1 %v898_v57 }
 0x105   :  { %989 = vmatpush.msrb.mxu2 %v914_v62 }
 0x106   :  { %950 = vmatpush.msrb.mxu0 %v881_v41  ;;  %970 = vmatpush.msrb.mxu1 %v897_v59  ;;  %v925_v59 = vld [vmem:[#allocation7 + $0x1c8] sm:$0xff] }
 0x107   :  { %990 = vmatpush.msrb.mxu2 %v913_v2 }
 0x108   :  { %951 = vmatpush.msrb.mxu0 %v880_v44  ;;  %971 = vmatpush.msrb.mxu1 %v896_v63  ;;  %v902_v44 = vld [vmem:[#allocation7 + $0x110] sm:$0xff]  ;;  %v924_v63 = vld [vmem:[#allocation7 + $0x1c0] sm:$0xff] }
 0x109   :  { %991 = vmatpush.msrb.mxu2 %v912_v8  ;;  %v922_v8 = vld [vmem:[#allocation7 + $0x1b0] sm:$0xff] }
 0x10a   :  { %952 = vmatpush.msrb.mxu0 %v879_v45  ;;  %972 = vmatpush.msrb.mxu1 %v895_v1  ;;  %v930_v45 = vld [vmem:[#allocation7 + $0x1f0] sm:$0xff]  ;;  %v943_v1 = vld [vmem:[#allocation7 + $0x258] sm:$0xff] }
 0x10b   :  { %992 = vmatpush.msrb.mxu2 %v911_v12  ;;  %1009 = vmatpush.msrb.mxu3 %v930_v45  ;;  %v921_v12 = vld [vmem:[#allocation7 + $0x1a8] sm:$0xff] }
 0x10c   :  { %953 = vmatpush.msrb.mxu0 %v878_v46  ;;  %973 = vmatpush.msrb.mxu1 %v894_v3 }
 0x10d   :  { %993 = vmatpush.msrb.mxu2 %v910_v16  ;;  %v920_v16 = vld [vmem:[#allocation7 + $0x1a0] sm:$0xff] }
 0x10e   :  { %954 = vmatpush.msrb.mxu0 %v877_v47  ;;  %974 = vmatpush.msrb.mxu1 %v893_v7  ;;  %v929_v47 = vld [vmem:[#allocation7 + $0x1e8] sm:$0xff] }
 0x10f   :  { %994 = vmatpush.msrb.mxu2 %v909_v20  ;;  %1010 = vmatpush.msrb.mxu3 %v929_v47  ;;  %v938_v20 = vld [vmem:[#allocation7 + $0x230] sm:$0xff] }
 0x110   :  { %955 = vmatpush.msrb.mxu0 %v876_v49  ;;  %975 = vmatpush.msrb.mxu1 %v892_v11  ;;  %v928_v49 = vld [vmem:[#allocation7 + $0x1e0] sm:$0xff] }
 0x111   :  { %995 = vmatpush.msrb.mxu2 %v908_v23  ;;  %1011 = vmatpush.msrb.mxu3 %v928_v49  ;;  %v937_v23 = vld [vmem:[#allocation7 + $0x228] sm:$0xff] }
 0x112   :  { %956 = vmatpush.msrb.mxu0 %v875_v50  ;;  %976 = vmatpush.msrb.mxu1 %v891_v14  ;;  %v947_v50 = vld [vmem:[#allocation7 + $0x278] sm:$0xff] }
 0x113   :  { %996 = vmatpush.msrb.mxu2 %v907_v26  ;;  %v936_v26 = vld [vmem:[#allocation7 + $0x220] sm:$0xff] }
 0x114   :  { %957 = vmatpush.msrb.mxu0 %v874_v51  ;;  %977 = vmatpush.msrb.mxu1 %v890_v19  ;;  %v927_v51 = vld [vmem:[#allocation7 + $0x1d8] sm:$0xff] }
 0x115   :  { %v470_v4 = vpop.f32.mrf.mxu1  ;;  %997 = vmatpush.msrb.mxu2 %v906_v29  ;;  %1012 = vmatpush.msrb.mxu3 %v927_v51  ;;  %v919_v19 = vld [vmem:[#allocation7 + $0x198] sm:$0xff] }
 0x116   :  { %958 = vmatpush.msrb.mxu0 %v873_v52  ;;  %978 = vmatpush.msrb.mxu1 %v889_v22  ;;  %v946_v52 = vld [vmem:[#allocation7 + $0x270] sm:$0xff]  ;;  %v935_v29 = vld [vmem:[#allocation7 + $0x218] sm:$0xff] }
 0x117   :  { %v450_v5 = vpop.f32.mrf.mxu0  ;;  %998 = vmatpush.msrb.mxu2 %v905_v31  ;;  %1013 = vmatpush.msrb.mxu3 %v926_v55  ;;  %v918_v22 = vld [vmem:[#allocation7 + $0x190] sm:$0xff] }
 0x118   :  { %959 = vmatpush.msrb.mxu0 %v872_v53  ;;  %v471_v9 = vadd.f32 %v470_v4, %v450_v5  ;;  %979 = vmatpush.msrb.mxu1 %v888_v25  ;;  %v942_v4 = vld [vmem:[#allocation7 + $0x250] sm:$0xff]  ;;  %v917_v25 = vld [vmem:[#allocation7 + $0x188] sm:$0xff] }
 0x119   :  { %999 = vmatpush.msrb.mxu2 %v904_v33  ;;  %1014 = vmatpush.msrb.mxu3 %v925_v59 }
 0x11a   :  { %960 = vmatpush.msrb.mxu0 %v871_v54  ;;  %v833_v17 = vmul.f32 %v471_v9, %v471_v9  ;;  %980 = vmatpush.msrb.mxu1 %v887_v28  ;;  %v941_v9 = vld [vmem:[#allocation7 + $0x248] sm:$0xff]  ;;  %v916_v28 = vld [vmem:[#allocation7 + $0x180] sm:$0xff] }
 0x11b   :  { %v1238_v42 = vpop.f32.mrf.mxu3  ;;  %1000 = vmatpush.msrb.mxu2 %v903_v38  ;;  %1015 = vmatpush.msrb.mxu3 %v924_v63 }
 0x11c   :  { %961 = vmatpush.msrb.mxu0 %v870_v56  ;;  %981 = vmatpush.msrb.mxu1 %v886_v15  ;;  %v945_v56 = vld [vmem:[#allocation7 + $0x268] sm:$0xff]  ;;  %v934_v15 = vld [vmem:[#allocation7 + $0x210] sm:$0xff] }
 0x11d   :  { %v1240_v43 = vpop.f32.mrf.mxu2  ;;  %1001 = vmatpush.msrb.mxu2 %v902_v44 }
 0x11e   :  { %962 = vmatpush.msrb.mxu0 %v869_v58  ;;  %982 = vmatpush.msrb.mxu1 %v885_v0  ;;  %v511_v54 = vadd.f32 %v1238_v42, %v1240_v43  ;;  %v923_v43 = vld [vmem:[#allocation7 + $0x1b8] sm:$0xff]  ;;  %v933_v0 = vld [vmem:[#allocation7 + $0x208] sm:$0xff] }
 0x11f   :  { %v1244_v27 = vpop.f32.mrf.mxu1  ;;  %1016 = vmatpush.msrb.mxu3 %v923_v43 }
 0x120   :  { %963 = vmatpush.msrb.mxu0 %v868_v61  ;;  %983 = vmatpush.msrb.mxu1 %v884_v37  ;;  %v834_v61 = vmul.f32 %v511_v54, %v511_v54 }
 0x121   :  { %v530_v30 = vpop.f32.mrf.mxu0  ;;  %1017 = vmatpush.msrb.mxu3 %v922_v8 }
 0x122   :  { %1028 = vmatpush.msra.mxu0 %v947_v50  ;;  %v551_v3 = vadd.f32 %v1244_v27, %v530_v30 }
 0x123   :  { %1018 = vmatpush.msrb.mxu3 %v921_v12 }
 0x124   :  { %1029 = vmatpush.msra.mxu0 %v946_v52 }
 0x125   :  { %v590_v32 = vpop.f32.mrf.mxu3  ;;  %1019 = vmatpush.msrb.mxu3 %v920_v16 }
 0x126   :  { %1030 = vmatpush.msra.mxu0 %v945_v56 }
 0x127   :  { %v570_v48 = vpop.f32.mrf.mxu2  ;;  %1020 = vmatpush.msrb.mxu3 %v919_v19 }
 0x128   :  { %v1242_v34 = vadd.f32 %v590_v32, %v570_v48  ;;  %v901_v32 = vld [vmem:[#allocation7 + $0x108] sm:$0xff]  ;;  %v900_v48 = vld [vmem:[#allocation7 + $0x100] sm:$0xff]  ;;  %1031 = vmatpush.msra.mxu0 %v944_v60 }
 0x129   :  { %1002 = vmatpush.msrb.mxu2 %v901_v32  ;;  %1021 = vmatpush.msrb.mxu3 %v918_v22 }
 0x12a   :  { %1032 = vmatpush.msra.mxu0 %v943_v1  ;;  %v836_v39 = vmul.f32 %v1242_v34, %v1242_v34 }
 0x12b   :  { %1003 = vmatpush.msrb.mxu2 %v900_v48  ;;  %1022 = vmatpush.msrb.mxu3 %v917_v25 }
 0x12c   :  { %1033 = vmatpush.msra.mxu0 %v942_v4 }
 0x12d   :  { %1023 = vmatpush.msrb.mxu3 %v916_v28 }
 0x12e   :  { %1034 = vmatpush.msra.mxu0 %v941_v9 }
 0x138   :  { %v1246_v40 = vpop.f32.mrf.mxu1 }
 0x13b   :  { %v1248_v46 = vpop.f32.mrf.mxu0 }
 0x13c   :  { %v631_v44 = vadd.f32 %v1246_v40, %v1248_v46 }
 0x13e   :  { %v837_v50 = vmul.f32 %v631_v44, %v631_v44 }
 0x13f   :  { %v670_v6 = vpop.f32.mrf.mxu3 }
 0x141   :  { %v650_v10 = vpop.f32.mrf.mxu2 }
 0x142   :  { %v671_v13 = vadd.f32 %v670_v6, %v650_v10  ;;  %v835_v10 = vmul.f32 %v551_v3, %v551_v3 }
 0x144   :  { %v838_v18 = vmul.f32 %v671_v13, %v671_v13  ;;  %v940_v13 = vld [vmem:[#allocation7 + $0x240] sm:$0xff] }
 0x145   :  { %1035 = vmatpush.msra.mxu0 %v940_v13 }
 0x146   :  { %v843_v21 = vadd.f32 %v838_v18, %v833_v17  ;;  %v939_v17 = vld [vmem:[#allocation7 + $0x238] sm:$0xff] }
 0x147   :  { %1036 = vmatpush.msra.mxu0 %v939_v17 }
 0x148   :  { %v848_v24 = vmax.f32 %v843_v21, 1e-20 }
 0x149   :  { %1037 = vmatpush.msra.mxu0 %v938_v20 }
 0x14a   :  { %1067 = vlog2.f32 %v848_v24 }
 0x14b   :  { %1038 = vmatpush.msra.mxu0 %v937_v23 }
 0x14d   :  { %1039 = vmatpush.msra.mxu0 %v936_v26 }
 0x14f   :  { %1040 = vmatpush.msra.mxu0 %v935_v29 }
 0x150   :  { %v1068_v35 = vpop.eup %1067 }
 0x151   :  { %v854_v36 = vmul.f32 0.6931472, %v1068_v35  ;;  %1041 = vmatpush.msra.mxu0 %v934_v15  ;;  %v932_v35 = vld [vmem:[#allocation7 + $0x200] sm:$0xff] }
 0x153   :  { %v863_v41 = vmul.f32 2.1714723, %v854_v36  ;;  %1042 = vmatpush.msra.mxu0 %v933_v0 }
 0x155   :  { %964 = vmatmul.f32.vlgmr.msrb.gmra.mxu0 %v863_v41 }
 0x156   :  { %1043 = vmatpush.msra.mxu0 %v932_v35 }
 0x15a   :  { %v710_v53 = vpop.f32.mrf.mxu1 }
 0x15d   :  { %v690_v57 = vpop.f32.mrf.mxu0 }
 0x15e   :  { %v711_v58 = vadd.f32 %v710_v53, %v690_v57 }
 0x160   :  { %v839_v62 = vmul.f32 %v711_v58, %v711_v58 }
 0x161   :  { %v750_v2 = vpop.f32.mrf.mxu3 }
 0x162   :  { %v844_v42 = vadd.f32 %v839_v62, %v834_v61 }
 0x163   :  { %v730_v5 = vpop.f32.mrf.mxu2 }
 0x164   :  { %v849_v6 = vmax.f32 %v844_v42, 1e-20  ;;  %v751_v7 = vadd.f32 %v750_v2, %v730_v5 }
 0x166   :  { %1069 = vlog2.f32 %v849_v6  ;;  %v840_v11 = vmul.f32 %v751_v7, %v751_v7 }
 0x168   :  { %v845_v14 = vadd.f32 %v840_v11, %v835_v10 }
 0x16a   :  { %v850_v18 = vmax.f32 %v845_v14, 1e-20 }
 0x16c   :  { %v1070_v21 = vpop.eup %1069  ;;  %1071 = vlog2.f32 %v850_v18 }
 0x16d   :  { %v856_v24 = vmul.f32 0.6931472, %v1070_v21 }
 0x16f   :  { %v864_v27 = vmul.f32 2.1714723, %v856_v24 }
 0x171   :  { %984 = vmatmul.f32.vlgmr.msrb.gmra.mxu1 %v864_v27 }
 0x172   :  { %v1072_v30 = vpop.eup %1071 }
 0x173   :  { %v858_v31 = vmul.f32 0.6931472, %v1072_v30 }
 0x175   :  { %v865_v33 = vmul.f32 2.1714723, %v858_v31 }
 0x177   :  { %1004 = vmatmul.f32.vlgmr.msrb.gmra.mxu2 %v865_v33 }
 0x17c   :  { %v790_v36 = vpop.f32.mrf.mxu1 }
 0x17e   :  { %v770_v37 = vpop.f32.mrf.mxu0 }
 0x17f   :  { %v791_v38 = vadd.f32 %v790_v36, %v770_v37 }
 0x181   :  { %v841_v41 = vmul.f32 %v791_v38, %v791_v38 }
 0x183   :  { %v846_v45 = vadd.f32 %v841_v41, %v836_v39  ;;  %v830_v32 = vpop.f32.mrf.mxu3 }
 0x184   :  { %v810_v47 = vpop.f32.mrf.mxu2 }
 0x185   :  { %v851_v48 = vmax.f32 %v846_v45, 1e-20  ;;  %v831_v49 = vadd.f32 %v830_v32, %v810_v47 }
 0x187   :  { %1073 = vlog2.f32 %v851_v48  ;;  %v842_v51 = vmul.f32 %v831_v49, %v831_v49 }
 0x189   :  { %v847_v52 = vadd.f32 %v842_v51, %v837_v50 }
 0x18b   :  { %v852_v53 = vmax.f32 %v847_v52, 1e-20 }
 0x18d   :  { %v1074_v54 = vpop.eup %1073  ;;  %1075 = vlog2.f32 %v852_v53 }
 0x18e   :  { %v860_v55 = vmul.f32 0.6931472, %v1074_v54 }
 0x190   :  { %v866_v56 = vmul.f32 2.1714723, %v860_v55 }
 0x192   :  { %1024 = vmatmul.f32.vlgmr.msrb.gmra.mxu3 %v866_v56 }
 0x193   :  { %v1076_v34 = vpop.eup %1075 }
 0x194   :  { %v862_v57 = vmul.f32 0.6931472, %v1076_v34 }
 0x196   :  { %v867_v58 = vmul.f32 2.1714723, %v862_v57 }
 0x198   :  { %1044 = vmatmul.f32.vlgmr.msra.gmra.mxu0 %v867_v58 }
 0x1d2   :  { %v965_v40 = vpop.f32.mrf.mxu0 }
 0x1ee   :  { %v985_v46 = vpop.f32.mrf.mxu1 }
 0x1ef   :  { %v986_v60 = vadd.f32 %v985_v46, %v965_v40 }
 0x1fa   :  { %v1005_v59 = vpop.f32.mrf.mxu2 }
 0x1fb   :  { %v1006_v61 = vadd.f32 %v1005_v59, %v986_v60 }
 0x215   :  { %v1025_v62 = vpop.f32.mrf.mxu3  ;;  %v1045_v1 = vpop.f32.mrf.mxu0 }
 0x216   :  { %v1026_v63 = vadd.f32 %v1025_v62, %v1006_v61 }
 0x218   :  { %v1046_v2 = vadd.f32 %v1045_v1, %v1026_v63 }
 0x21a   :  { %1048 = vst [vmem:[%s1265_s5] sm:$0xff] %v1046_v2 }
 0x21b   :  { %1053 = vsyncpa [#allocation4], 1 }
 0x21c   :  { %1054 = vsyncpa [#allocation8], 1 }
 0x21d   :  { %1055 = vsyncpa [#allocation5], 1 }

</bundles_post_ra>
